<compile_context>
chip_gen: v6e
topology: v6e:2x2x1
jax: 0.10.0
libtpu: 0.0.40
codegen_flags: <defaults>
</compile_context>

<pallas_src>
import functools

import jax
import jax.numpy as jnp
from jax.experimental import pallas as pl
from jax.experimental.pallas import tpu as pltpu

LEAKY_SLOPE = 0.01   # PyTorch default negative_slope
BN_EPS = 1e-5

_GRU_KEYS = ("wir", "wiz", "win", "whr", "whz", "whn",
             "b_r", "b_z", "b_in", "b_hn")


# ----------------------------------------------------------------------------
# small in-kernel helpers (operate on loaded values, not refs)
# ----------------------------------------------------------------------------
def _leaky(x):
    return jnp.where(x >= 0, x, LEAKY_SLOPE * x)


def _elu(x):
    return jnp.where(x > 0, x, jnp.exp(x) - 1.0)


def _mm(a, b):
    # bf16 operands into the MXU, f32 accumulation.
    return jnp.dot(a.astype(jnp.bfloat16), b.astype(jnp.bfloat16),
                   preferred_element_type=jnp.float32)


def _softmax_agg(logits, msgs, dst_oh, dstT):
    """DGL edge_softmax (grouped by destination) + sum aggregation + ELU.

    logits [E,1] f32, msgs [E,D] f32, dst_oh [N,E] bf16 one-hot, dstT [E,N] bf16.
    Uses a global max shift (grouped softmax is shift invariant) so the only
    O(N*E) work is on the MXU.
    """
    ex = jnp.exp(logits - jnp.max(logits, axis=0, keepdims=True))   # [E,1]
    denom_n = _mm(dst_oh, ex)                                       # [N,1]
    denom_e = _mm(dstT, denom_n)                                    # [E,1] gather
    a = ex * pl.reciprocal(jnp.maximum(denom_e, 1e-30), approx=True)
    ctx = _mm(dst_oh, a * msgs)                                     # [N,D]
    return _elu(ctx)


def _gru_relu(ctx, h, g):
    """PyTorch GRUCell(ctx, h) followed by ReLU.  g: dict of loaded arrays."""
    r = jax.nn.sigmoid(_mm(ctx, g["wir"]) + _mm(h, g["whr"]) + g["b_r"])
    z = jax.nn.sigmoid(_mm(ctx, g["wiz"]) + _mm(h, g["whz"]) + g["b_z"])
    n = jnp.tanh(_mm(ctx, g["win"]) + g["b_in"] + r * (_mm(h, g["whn"]) + g["b_hn"]))
    hn = (1.0 - z) * n + z * h
    return jnp.maximum(hn, 0.0)


# ----------------------------------------------------------------------------
# Kernel A: GetContext + AttentiveGRU1 (fused) -> node_h [N, F]
# ----------------------------------------------------------------------------
def _get_context_kernel(hv_ref, he_ref, dst_oh_ref, dstT_ref, srcT_ref, *rest):
    (w_pn, b_pn, w_pe1n, w_pe1e, b_pe1,
     w_pe2d, w_pe2e, b_pe2, w_et, b_et) = [r[...] for r in rest[:10]]
    gru = dict(zip(_GRU_KEYS, [r[...] for r in rest[10:20]]))
    o_ref = rest[20]

    hv = hv_ref[...]
    he = he_ref[...]
    dst_oh = dst_oh_ref[...]
    dstT = dstT_ref[...]
    srcT = srcT_ref[...]

    # project_node: hv_new = leaky_relu(hv @ Wpn + b)
    hv_new = _leaky(_mm(hv, w_pn) + b_pn)                                   # [N,F]
    # project_edge1 on [hv[src], he]  (src gather via one-hot matmul)
    he1 = _leaky(_mm(srcT, _mm(hv, w_pe1n)) + _mm(he, w_pe1e) + b_pe1)      # [E,F]
    # project_edge2 on [hv_new[dst], he1] -> per-edge logit
    logits = _leaky(_mm(dstT, _mm(hv_new, w_pe2d)) + _mm(he1, w_pe2e) + b_pe2)
    # edge message = softmax(logits | dst) * edge_transform(he1); aggregate; ELU
    msgs = _mm(he1, w_et) + b_et
    ctx = _softmax_agg(logits, msgs, dst_oh, dstT)
    # ReLU(GRU(context, hv_new))  (no BN in GetContext)
    o_ref[...] = _gru_relu(ctx, hv_new, gru)


# ----------------------------------------------------------------------------
# Kernel B: one GNNLayer (project_edge + AttentiveGRU2 + BN) -> node_h [N, F]
# ----------------------------------------------------------------------------
def _gnn_layer_kernel(h_ref, dst_oh_ref, dstT_ref, srcT_ref, *rest):
    (w_pe_d, w_pe_s, b_pe, w_pn, b_pn, bn_s, bn_t) = [r[...] for r in rest[:7]]
    gru = dict(zip(_GRU_KEYS, [r[...] for r in rest[7:17]]))
    o_ref = rest[17]

    h = h_ref[...]
    dst_oh = dst_oh_ref[...]
    dstT = dstT_ref[...]
    srcT = srcT_ref[...]

    # project_edge on [h[dst], h[src]] -> logits [E,1]
    logits = _leaky(_mm(dstT, _mm(h, w_pe_d)) + _mm(srcT, _mm(h, w_pe_s)) + b_pe)
    # project_node (no activation), gathered to the source side of each edge
    msgs = _mm(srcT, _mm(h, w_pn) + b_pn)                                   # [E,F]
    ctx = _softmax_agg(logits, msgs, dst_oh, dstT)
    hn = _gru_relu(ctx, h, gru)
    # BatchNorm (eval-mode affine) applied after relu(gru(...)), as in PyTorch
    o_ref[...] = hn * bn_s + bn_t


# ----------------------------------------------------------------------------
# Kernel C: DTIConvGraph3LayerTest + EdgeWeightedSumAndMax (fused)
#   outputs: h_sum [G,O], h_max [G,O]
# ----------------------------------------------------------------------------
def _edge_conv_readout_kernel(a_ref, src3T_ref, dst3T_ref, e3_ref, gm_ref, gmT_ref,
                              *rest, num_graphs):
    (w1s, w1d, w1e, b1, bn_s, bn_t, rd_w, rd_b) = [r[...] for r in rest[:8]]
    hsum_ref, hmax_ref = rest[8], rest[9]

    A = a_ref[...]                                                          # [N,F]
    # W2 already folded into w1s/w1d (and b2 into b1) on the host.
    y = (_mm(src3T_ref[...], _mm(A, w1s))
         + _mm(dst3T_ref[...], _mm(A, w1d))
         + e3_ref[...] * w1e
         + b1)
    bond = _leaky(y) * bn_s + bn_t                                          # [E3,O]

    # atom_weighting: w = tanh(bond @ rd_w + rd_b)
    w = jnp.tanh(_mm(bond, rd_w) + rd_b)                                    # [E3,1]
    # weighted sum per graph as a single MXU matmul: [G,E3] @ [E3,O]
    hsum_ref[...] = _mm(gmT_ref[...], w * bond)

    # per-graph masked max, assembled into one lane-dense [G,O] slab
    gm = gm_ref[...]                                                        # [E3,G]
    out_dim = bond.shape[1]
    row_id = jax.lax.broadcasted_iota(jnp.int32, (num_graphs, out_dim), 0)
    h_max = jnp.zeros((num_graphs, out_dim), jnp.float32)
    for g in range(num_graphs):
        mg = gm[:, g:g + 1]                                                 # [E3,1]
        m_g = jnp.max(jnp.where(mg > 0, bond, -1e30), axis=0, keepdims=True)
        h_max = jnp.where(row_id == g, m_g, h_max)
    hmax_ref[...] = h_max


# ----------------------------------------------------------------------------
# Kernel D: whole FC head (n_FC_layer blocks + output linear) in one kernel
# ----------------------------------------------------------------------------
def _fc_kernel(h_ref, *rest, n_blocks):
    h = h_ref[...]
    idx = 0
    for _ in range(n_blocks):
        w = rest[idx][...]
        b = rest[idx + 1][...]
        s = rest[idx + 2][...]
        t = rest[idx + 3][...]
        idx += 4
        h = _leaky(_mm(h, w) + b) * s + t
    w_out = rest[idx][...]
    b_out = rest[idx + 1][...]
    o_ref = rest[idx + 2]
    o_ref[...] = _mm(h, w_out) + b_out


# ----------------------------------------------------------------------------
# pallas_call wrapper
# ----------------------------------------------------------------------------
def _pcall(kernel, out_shape, args):
    multi = isinstance(out_shape, (tuple, list))
    if multi:
        out_specs = tuple(pl.BlockSpec(memory_space=pltpu.MemorySpace.VMEM)
                          for _ in out_shape)
        out_shape = tuple(out_shape)
    else:
        out_specs = pl.BlockSpec(memory_space=pltpu.MemorySpace.VMEM)
    return pl.pallas_call(
        kernel,
        out_shape=out_shape,
        in_specs=[pl.BlockSpec(memory_space=pltpu.MemorySpace.VMEM) for _ in args],
        out_specs=out_specs,
        compiler_params=pltpu.CompilerParams(vmem_limit_bytes=32 * 1024 * 1024),
    )(*args)


# ----------------------------------------------------------------------------
# Parameter init (PyTorch-style uniform bounds; weights pre-cast to bf16,
# GRU gates split, BN folded to eval-mode affine, W2 folded into W1 halves).
# ----------------------------------------------------------------------------
def init_params(key, node_feat_size, edge_feat_size, num_layers, graph_feat_size,
                outdim_g3, d_FC_layer, n_FC_layer, n_tasks):
    keys = iter(jax.random.split(key, 256))
    bf16 = jnp.bfloat16

    def u(shape, bound, dtype=jnp.float32):
        return jax.random.uniform(next(keys), shape, jnp.float32, -bound, bound).astype(dtype)

    def bn(dim):
        gamma = 1.0 + 0.1 * jax.random.normal(next(keys), (1, dim), jnp.float32)
        beta = 0.1 * jax.random.normal(next(keys), (1, dim), jnp.float32)
        # eval-mode BN (running_mean=0, running_var=1) folded to affine
        return gamma / jnp.sqrt(1.0 + BN_EPS), beta

    def gru(in_size, hidden):
        bnd = 1.0 / hidden ** 0.5
        g = {}
        for name, d_in in (("wir", in_size), ("wiz", in_size), ("win", in_size),
                           ("whr", hidden), ("whz", hidden), ("whn", hidden)):
            g[name] = u((d_in, hidden), bnd, bf16)
        b_ir, b_iz, b_in_, b_hr, b_hz, b_hn = (u((1, hidden), bnd) for _ in range(6))
        g["b_r"] = b_ir + b_hr
        g["b_z"] = b_iz + b_hz
        g["b_in"] = b_in_
        g["b_hn"] = b_hn
        return g

    F = graph_feat_size
    O = outdim_g3
    p = {}

    # ---- GetContext ----
    b_pn = 1.0 / node_feat_size ** 0.5
    b_pe1 = 1.0 / (node_feat_size + edge_feat_size) ** 0.5
    b_pe2 = 1.0 / (2 * F) ** 0.5
    b_et = 1.0 / F ** 0.5
    p["gc"] = {
        "w_pn": u((node_feat_size, F), b_pn, bf16), "b_pn": u((1, F), b_pn),
        "w_pe1n": u((node_feat_size, F), b_pe1, bf16),
        "w_pe1e": u((edge_feat_size, F), b_pe1, bf16), "b_pe1": u((1, F), b_pe1),
        "w_pe2d": u((F, 1), b_pe2, bf16), "w_pe2e": u((F, 1), b_pe2, bf16),
        "b_pe2": u((1, 1), b_pe2),
        "w_et": u((F, F), b_et, bf16), "b_et": u((1, F), b_et),
        "gru": gru(F, F),
    }

    # ---- GNN layers (num_layers - 1) ----
    layers = []
    for _ in range(num_layers - 1):
        b_pe = 1.0 / (2 * F) ** 0.5
        b_pnl = 1.0 / F ** 0.5
        s, t = bn(F)
        layers.append({
            "w_pe_d": u((F, 1), b_pe, bf16), "w_pe_s": u((F, 1), b_pe, bf16),
            "b_pe": u((1, 1), b_pe),
            "w_pn": u((F, F), b_pnl, bf16), "b_pn": u((1, F), b_pnl),
            "bn_s": s, "bn_t": t,
            "gru": gru(F, F),
        })
    p["gnn_layers"] = layers

    # ---- DTIConvGraph3LayerTest: fold W2 into W1 halves on the host ----
    b_w1 = 1.0 / (2 * F + 1) ** 0.5
    b_w2 = 1.0 / F ** 0.5
    w1s = u((F, O), b_w1)
    w1d = u((F, O), b_w1)
    w1e = u((1, O), b_w1)
    b1 = u((1, O), b_w1)
    w2 = u((F, O), b_w2)
    b2 = u((1, O), b_w2)
    s, t = bn(O)
    b_rd = 1.0 / O ** 0.5
    p["ec"] = {
        "w1s": (w1s + w2).astype(bf16), "w1d": (w1d + w2).astype(bf16),
        "w1e": w1e, "b1": b1 + b2, "bn_s": s, "bn_t": t,
        "rd_w": u((O, 1), b_rd, bf16), "rd_b": u((1, 1), b_rd),
    }

    # ---- FC head ----
    blocks = []
    in_dim = 2 * O
    for _ in range(n_FC_layer):
        b_fc = 1.0 / in_dim ** 0.5
        s, t = bn(d_FC_layer)
        blocks.append({"w": u((in_dim, d_FC_layer), b_fc, bf16),
                       "b": u((1, d_FC_layer), b_fc), "bn_s": s, "bn_t": t})
        in_dim = d_FC_layer
    b_out = 1.0 / d_FC_layer ** 0.5
    p["fc"] = {"blocks": blocks,
               "w_out": u((d_FC_layer, n_tasks), b_out, bf16),
               "b_out": u((1, n_tasks), b_out)}
    return p


# ----------------------------------------------------------------------------
# Full forward pass: 4 fused pallas_calls
# ----------------------------------------------------------------------------
def forward(params, graph, node_feats, edge_feats, edge_feats3):
    p = params
    gc = p["gc"]
    N = node_feats.shape[0]
    F = gc["w_pn"].shape[1]

    # ===== cov_graph: GetContext + AttentiveGRU1 =====
    args = [node_feats, edge_feats, graph["dst_oh"], graph["dstT"], graph["srcT"],
            gc["w_pn"], gc["b_pn"], gc["w_pe1n"], gc["w_pe1e"], gc["b_pe1"],
            gc["w_pe2d"], gc["w_pe2e"], gc["b_pe2"], gc["w_et"], gc["b_et"]]
    args += [gc["gru"][k] for k in _GRU_KEYS]
    node_h = _pcall(_get_context_kernel,
                    jax.ShapeDtypeStruct((N, F), jnp.float32), args)
    sum_node = node_h

    # ===== cov_graph: GNN layers =====
    for lp in p["gnn_layers"]:
        args = [node_h, graph["dst_oh"], graph["dstT"], graph["srcT"],
                lp["w_pe_d"], lp["w_pe_s"], lp["b_pe"], lp["w_pn"], lp["b_pn"],
                lp["bn_s"], lp["bn_t"]]
        args += [lp["gru"][k] for k in _GRU_KEYS]
        node_h = _pcall(_gnn_layer_kernel,
                        jax.ShapeDtypeStruct((N, F), jnp.float32), args)
        sum_node = sum_node + node_h

    # ===== noncov_graph edge conv + weighted-sum / max readout =====
    ec = p["ec"]
    G = graph["gmask3T"].shape[0]
    O = ec["w1s"].shape[1]
    args = [sum_node, graph["src3T"], graph["dst3T"], edge_feats3,
            graph["gmask3"], graph["gmask3T"],
            ec["w1s"], ec["w1d"], ec["w1e"], ec["b1"], ec["bn_s"], ec["bn_t"],
            ec["rd_w"], ec["rd_b"]]
    h_sum, h_max = _pcall(
        functools.partial(_edge_conv_readout_kernel, num_graphs=G),
        (jax.ShapeDtypeStruct((G, O), jnp.float32),
         jax.ShapeDtypeStruct((G, O), jnp.float32)),
        args)
    h_g = jnp.concatenate([h_sum, h_max], axis=1)                           # [G, 2O]

    # ===== FC head =====
    fc = p["fc"]
    args = [h_g]
    for blk in fc["blocks"]:
        args += [blk["w"], blk["b"], blk["bn_s"], blk["bn_t"]]
    args += [fc["w_out"], fc["b_out"]]
    n_tasks = fc["w_out"].shape[1]
    out = _pcall(functools.partial(_fc_kernel, n_blocks=len(fc["blocks"])),
                 jax.ShapeDtypeStruct((G, n_tasks), jnp.float32), args)
    return out


# ----------------------------------------------------------------------------
if __name__ == "__main__":
    # Small, deterministic configuration
    node_feat_size = 8
    edge_feat_size = 6
    num_layers = 2
    graph_feat_size = 32
    outdim_g3 = 32
    d_FC_layer = 32
    n_FC_layer = 2
    dropout = 0.0          # eval mode -> identity
    n_tasks = 1

    # Batch of 2 graphs, 4 nodes each (nodes 0-3 -> graph 0, 4-7 -> graph 1)
    num_graphs = 2
    nodes_per_graph = 4
    N = num_graphs * nodes_per_graph

    base_src = jnp.array([0, 1, 1, 2, 2, 3, 3, 0], dtype=jnp.int32)
    base_dst = jnp.array([1, 0, 2, 1, 3, 2, 0, 3], dtype=jnp.int32)
    src = jnp.concatenate([base_src, base_src + nodes_per_graph])
    dst = jnp.concatenate([base_dst, base_dst + nodes_per_graph])
    E = src.shape[0]

    base3_src = jnp.array([0, 2, 1, 3, 0, 3], dtype=jnp.int32)
    base3_dst = jnp.array([2, 0, 3, 1, 3, 0], dtype=jnp.int32)
    src3 = jnp.concatenate([base3_src, base3_src + nodes_per_graph])
    dst3 = jnp.concatenate([base3_dst, base3_dst + nodes_per_graph])
    E3 = src3.shape[0]
    egid3 = jnp.concatenate([jnp.zeros(6, jnp.int32), jnp.ones(6, jnp.int32)])

    nids = jnp.arange(N)
    dst_oh = (nids[:, None] == dst[None, :]).astype(jnp.float32)            # [N,E]
    graph = {
        # one-hot gather/scatter matrices, bf16 (exact 0/1) for MXU feeds
        "dst_oh": dst_oh.astype(jnp.bfloat16),                              # [N,E]
        "dstT": dst_oh.T.astype(jnp.bfloat16),                              # [E,N]
        "srcT": (src[:, None] == nids[None, :]).astype(jnp.bfloat16),       # [E,N]
        "src3T": (src3[:, None] == nids[None, :]).astype(jnp.bfloat16),     # [E3,N]
        "dst3T": (dst3[:, None] == nids[None, :]).astype(jnp.bfloat16),     # [E3,N]
        "gmask3": (egid3[:, None] == jnp.arange(num_graphs)[None, :]
                   ).astype(jnp.float32),                                   # [E3,G]
        "gmask3T": (jnp.arange(num_graphs)[:, None] == egid3[None, :]
                    ).astype(jnp.bfloat16),                                 # [G,E3]
    }

    key = jax.random.PRNGKey(0)
    kp, kn, ke, k3 = jax.random.split(key, 4)
    params = init_params(kp, node_feat_size, edge_feat_size, num_layers,
                         graph_feat_size, outdim_g3, d_FC_layer, n_FC_layer, n_tasks)

    node_feats = jax.random.normal(kn, (N, node_feat_size), jnp.float32)
    edge_feats = jax.random.normal(ke, (E, edge_feat_size), jnp.float32)
    edge_feats3 = jax.random.normal(k3, (E3, 1), jnp.float32)

    out = jax.jit(forward)(params, graph, node_feats, edge_feats, edge_feats3)
    out = jax.block_until_ready(out)
    assert out.shape == (num_graphs, n_tasks)
    assert bool(jnp.all(jnp.isfinite(out)))
    print("KERNEL_OK")
</pallas_src>

<mosaic_0001>
module attributes {stable_mosaic.version = 11 : i64} {
  func.func @_get_context_kernel(%arg0: memref<8x8xf32, #tpu.memory_space<vmem>>, %arg1: memref<16x6xf32, #tpu.memory_space<vmem>>, %arg2: memref<8x16xbf16, #tpu.memory_space<vmem>>, %arg3: memref<16x8xbf16, #tpu.memory_space<vmem>>, %arg4: memref<16x8xbf16, #tpu.memory_space<vmem>>, %arg5: memref<8x32xbf16, #tpu.memory_space<vmem>>, %arg6: memref<1x32xf32, #tpu.memory_space<vmem>>, %arg7: memref<8x32xbf16, #tpu.memory_space<vmem>>, %arg8: memref<6x32xbf16, #tpu.memory_space<vmem>>, %arg9: memref<1x32xf32, #tpu.memory_space<vmem>>, %arg10: memref<32x1xbf16, #tpu.memory_space<vmem>>, %arg11: memref<32x1xbf16, #tpu.memory_space<vmem>>, %arg12: memref<1x1xf32, #tpu.memory_space<vmem>>, %arg13: memref<32x32xbf16, #tpu.memory_space<vmem>>, %arg14: memref<1x32xf32, #tpu.memory_space<vmem>>, %arg15: memref<32x32xbf16, #tpu.memory_space<vmem>>, %arg16: memref<32x32xbf16, #tpu.memory_space<vmem>>, %arg17: memref<32x32xbf16, #tpu.memory_space<vmem>>, %arg18: memref<32x32xbf16, #tpu.memory_space<vmem>>, %arg19: memref<32x32xbf16, #tpu.memory_space<vmem>>, %arg20: memref<32x32xbf16, #tpu.memory_space<vmem>>, %arg21: memref<1x32xf32, #tpu.memory_space<vmem>>, %arg22: memref<1x32xf32, #tpu.memory_space<vmem>>, %arg23: memref<1x32xf32, #tpu.memory_space<vmem>>, %arg24: memref<1x32xf32, #tpu.memory_space<vmem>>, %arg25: memref<8x32xf32, #tpu.memory_space<vmem>>) attributes {dimension_semantics = [], scalar_prefetch = 0 : i64, scratch_operands = 0 : i64, tpu.core_type = #tpu.core_type<tc>} {
    %c0 = arith.constant 0 : index
    %c0_0 = arith.constant 0 : index
    %0 = vector.load %arg5[%c0, %c0_0] : memref<8x32xbf16, #tpu.memory_space<vmem>>, vector<8x32xbf16>
    %c0_1 = arith.constant 0 : index
    %c0_2 = arith.constant 0 : index
    %1 = vector.load %arg6[%c0_1, %c0_2] : memref<1x32xf32, #tpu.memory_space<vmem>>, vector<1x32xf32>
    %c0_3 = arith.constant 0 : index
    %c0_4 = arith.constant 0 : index
    %2 = vector.load %arg7[%c0_3, %c0_4] : memref<8x32xbf16, #tpu.memory_space<vmem>>, vector<8x32xbf16>
    %c0_5 = arith.constant 0 : index
    %c0_6 = arith.constant 0 : index
    %3 = vector.load %arg8[%c0_5, %c0_6] : memref<6x32xbf16, #tpu.memory_space<vmem>>, vector<6x32xbf16>
    %c0_7 = arith.constant 0 : index
    %c0_8 = arith.constant 0 : index
    %4 = vector.load %arg9[%c0_7, %c0_8] : memref<1x32xf32, #tpu.memory_space<vmem>>, vector<1x32xf32>
    %c0_9 = arith.constant 0 : index
    %c0_10 = arith.constant 0 : index
    %5 = vector.load %arg10[%c0_9, %c0_10] : memref<32x1xbf16, #tpu.memory_space<vmem>>, vector<32x1xbf16>
    %c0_11 = arith.constant 0 : index
    %c0_12 = arith.constant 0 : index
    %6 = vector.load %arg11[%c0_11, %c0_12] : memref<32x1xbf16, #tpu.memory_space<vmem>>, vector<32x1xbf16>
    %c0_13 = arith.constant 0 : index
    %c0_14 = arith.constant 0 : index
    %7 = vector.load %arg12[%c0_13, %c0_14] : memref<1x1xf32, #tpu.memory_space<vmem>>, vector<1x1xf32>
    %c0_15 = arith.constant 0 : index
    %c0_16 = arith.constant 0 : index
    %8 = vector.load %arg13[%c0_15, %c0_16] : memref<32x32xbf16, #tpu.memory_space<vmem>>, vector<32x32xbf16>
    %c0_17 = arith.constant 0 : index
    %c0_18 = arith.constant 0 : index
    %9 = vector.load %arg14[%c0_17, %c0_18] : memref<1x32xf32, #tpu.memory_space<vmem>>, vector<1x32xf32>
    %c0_19 = arith.constant 0 : index
    %c0_20 = arith.constant 0 : index
    %10 = vector.load %arg15[%c0_19, %c0_20] : memref<32x32xbf16, #tpu.memory_space<vmem>>, vector<32x32xbf16>
    %c0_21 = arith.constant 0 : index
    %c0_22 = arith.constant 0 : index
    %11 = vector.load %arg16[%c0_21, %c0_22] : memref<32x32xbf16, #tpu.memory_space<vmem>>, vector<32x32xbf16>
    %c0_23 = arith.constant 0 : index
    %c0_24 = arith.constant 0 : index
    %12 = vector.load %arg17[%c0_23, %c0_24] : memref<32x32xbf16, #tpu.memory_space<vmem>>, vector<32x32xbf16>
    %c0_25 = arith.constant 0 : index
    %c0_26 = arith.constant 0 : index
    %13 = vector.load %arg18[%c0_25, %c0_26] : memref<32x32xbf16, #tpu.memory_space<vmem>>, vector<32x32xbf16>
    %c0_27 = arith.constant 0 : index
    %c0_28 = arith.constant 0 : index
    %14 = vector.load %arg19[%c0_27, %c0_28] : memref<32x32xbf16, #tpu.memory_space<vmem>>, vector<32x32xbf16>
    %c0_29 = arith.constant 0 : index
    %c0_30 = arith.constant 0 : index
    %15 = vector.load %arg20[%c0_29, %c0_30] : memref<32x32xbf16, #tpu.memory_space<vmem>>, vector<32x32xbf16>
    %c0_31 = arith.constant 0 : index
    %c0_32 = arith.constant 0 : index
    %16 = vector.load %arg21[%c0_31, %c0_32] : memref<1x32xf32, #tpu.memory_space<vmem>>, vector<1x32xf32>
    %c0_33 = arith.constant 0 : index
    %c0_34 = arith.constant 0 : index
    %17 = vector.load %arg22[%c0_33, %c0_34] : memref<1x32xf32, #tpu.memory_space<vmem>>, vector<1x32xf32>
    %c0_35 = arith.constant 0 : index
    %c0_36 = arith.constant 0 : index
    %18 = vector.load %arg23[%c0_35, %c0_36] : memref<1x32xf32, #tpu.memory_space<vmem>>, vector<1x32xf32>
    %c0_37 = arith.constant 0 : index
    %c0_38 = arith.constant 0 : index
    %19 = vector.load %arg24[%c0_37, %c0_38] : memref<1x32xf32, #tpu.memory_space<vmem>>, vector<1x32xf32>
    %c0_39 = arith.constant 0 : index
    %c0_40 = arith.constant 0 : index
    %20 = vector.load %arg0[%c0_39, %c0_40] : memref<8x8xf32, #tpu.memory_space<vmem>>, vector<8x8xf32>
    %c0_41 = arith.constant 0 : index
    %c0_42 = arith.constant 0 : index
    %21 = vector.load %arg1[%c0_41, %c0_42] : memref<16x6xf32, #tpu.memory_space<vmem>>, vector<16x6xf32>
    %c0_43 = arith.constant 0 : index
    %c0_44 = arith.constant 0 : index
    %22 = vector.load %arg2[%c0_43, %c0_44] : memref<8x16xbf16, #tpu.memory_space<vmem>>, vector<8x16xbf16>
    %c0_45 = arith.constant 0 : index
    %c0_46 = arith.constant 0 : index
    %23 = vector.load %arg3[%c0_45, %c0_46] : memref<16x8xbf16, #tpu.memory_space<vmem>>, vector<16x8xbf16>
    %c0_47 = arith.constant 0 : index
    %c0_48 = arith.constant 0 : index
    %24 = vector.load %arg4[%c0_47, %c0_48] : memref<16x8xbf16, #tpu.memory_space<vmem>>, vector<16x8xbf16>
    %25 = arith.truncf %20 : vector<8x8xf32> to vector<8x8xbf16>
    %cst = arith.constant dense<0.000000e+00> : vector<8x32xf32>
    %26 = tpu.matmul %25, %0, %cst {dimension_numbers = #tpu.dot_dimension_numbers<[1], [0], [0], [1], [0, 0, 1, 1], [], []>} : vector<8x8xbf16>, vector<8x32xbf16>, vector<8x32xf32> -> vector<8x32xf32>
    %27 = vector.broadcast %1 : vector<1x32xf32> to vector<8x32xf32>
    %28 = arith.addf %26, %27 : vector<8x32xf32>
    %cst_49 = arith.constant 0.000000e+00 : f32
    %29 = vector.broadcast %cst_49 : f32 to vector<8x32xf32>
    %30 = arith.cmpf oge, %28, %29 : vector<8x32xf32>
    %cst_50 = arith.constant 0.00999999977 : f32
    %31 = vector.broadcast %cst_50 : f32 to vector<8x32xf32>
    %32 = arith.mulf %31, %28 : vector<8x32xf32>
    %33 = arith.select %30, %28, %32 : vector<8x32xi1>, vector<8x32xf32>
    %34 = arith.truncf %20 : vector<8x8xf32> to vector<8x8xbf16>
    %cst_51 = arith.constant dense<0.000000e+00> : vector<8x32xf32>
    %35 = tpu.matmul %34, %2, %cst_51 {dimension_numbers = #tpu.dot_dimension_numbers<[1], [0], [0], [1], [0, 0, 1, 1], [], []>} : vector<8x8xbf16>, vector<8x32xbf16>, vector<8x32xf32> -> vector<8x32xf32>
    %36 = arith.truncf %35 : vector<8x32xf32> to vector<8x32xbf16>
    %cst_52 = arith.constant dense<0.000000e+00> : vector<16x32xf32>
    %37 = tpu.matmul %24, %36, %cst_52 {dimension_numbers = #tpu.dot_dimension_numbers<[1], [0], [0], [1], [0, 0, 1, 1], [], []>} : vector<16x8xbf16>, vector<8x32xbf16>, vector<16x32xf32> -> vector<16x32xf32>
    %38 = arith.truncf %21 : vector<16x6xf32> to vector<16x6xbf16>
    %cst_53 = arith.constant dense<0.000000e+00> : vector<16x32xf32>
    %39 = tpu.matmul %38, %3, %cst_53 {dimension_numbers = #tpu.dot_dimension_numbers<[1], [0], [0], [1], [0, 0, 1, 1], [], []>} : vector<16x6xbf16>, vector<6x32xbf16>, vector<16x32xf32> -> vector<16x32xf32>
    %40 = arith.addf %37, %39 : vector<16x32xf32>
    %41 = vector.broadcast %4 : vector<1x32xf32> to vector<16x32xf32>
    %42 = arith.addf %40, %41 : vector<16x32xf32>
    %cst_54 = arith.constant 0.000000e+00 : f32
    %43 = vector.broadcast %cst_54 : f32 to vector<16x32xf32>
    %44 = arith.cmpf oge, %42, %43 : vector<16x32xf32>
    %cst_55 = arith.constant 0.00999999977 : f32
    %45 = vector.broadcast %cst_55 : f32 to vector<16x32xf32>
    %46 = arith.mulf %45, %42 : vector<16x32xf32>
    %47 = arith.select %44, %42, %46 : vector<16x32xi1>, vector<16x32xf32>
    %48 = arith.truncf %33 : vector<8x32xf32> to vector<8x32xbf16>
    %cst_56 = arith.constant dense<0.000000e+00> : vector<8x1xf32>
    %49 = tpu.matmul %48, %5, %cst_56 {dimension_numbers = #tpu.dot_dimension_numbers<[1], [0], [0], [1], [0, 0, 1, 1], [], []>} : vector<8x32xbf16>, vector<32x1xbf16>, vector<8x1xf32> -> vector<8x1xf32>
    %50 = arith.truncf %49 : vector<8x1xf32> to vector<8x1xbf16>
    %cst_57 = arith.constant dense<0.000000e+00> : vector<16x1xf32>
    %51 = tpu.matmul %23, %50, %cst_57 {dimension_numbers = #tpu.dot_dimension_numbers<[1], [0], [0], [1], [0, 0, 1, 1], [], []>} : vector<16x8xbf16>, vector<8x1xbf16>, vector<16x1xf32> -> vector<16x1xf32>
    %52 = arith.truncf %47 : vector<16x32xf32> to vector<16x32xbf16>
    %cst_58 = arith.constant dense<0.000000e+00> : vector<16x1xf32>
    %53 = tpu.matmul %52, %6, %cst_58 {dimension_numbers = #tpu.dot_dimension_numbers<[1], [0], [0], [1], [0, 0, 1, 1], [], []>} : vector<16x32xbf16>, vector<32x1xbf16>, vector<16x1xf32> -> vector<16x1xf32>
    %54 = arith.addf %51, %53 : vector<16x1xf32>
    %55 = vector.broadcast %7 : vector<1x1xf32> to vector<16x1xf32>
    %56 = arith.addf %54, %55 : vector<16x1xf32>
    %cst_59 = arith.constant 0.000000e+00 : f32
    %57 = vector.broadcast %cst_59 : f32 to vector<16x1xf32>
    %58 = arith.cmpf oge, %56, %57 : vector<16x1xf32>
    %cst_60 = arith.constant 0.00999999977 : f32
    %59 = vector.broadcast %cst_60 : f32 to vector<16x1xf32>
    %60 = arith.mulf %59, %56 : vector<16x1xf32>
    %61 = arith.select %58, %56, %60 : vector<16x1xi1>, vector<16x1xf32>
    %62 = arith.truncf %47 : vector<16x32xf32> to vector<16x32xbf16>
    %cst_61 = arith.constant dense<0.000000e+00> : vector<16x32xf32>
    %63 = tpu.matmul %62, %8, %cst_61 {dimension_numbers = #tpu.dot_dimension_numbers<[1], [0], [0], [1], [0, 0, 1, 1], [], []>} : vector<16x32xbf16>, vector<32x32xbf16>, vector<16x32xf32> -> vector<16x32xf32>
    %64 = vector.broadcast %9 : vector<1x32xf32> to vector<16x32xf32>
    %65 = arith.addf %63, %64 : vector<16x32xf32>
    %cst_62 = arith.constant dense<0xFF800000> : vector<1xf32>
    %66 = vector.multi_reduction <maximumf>, %61, %cst_62 [0] : vector<16x1xf32> to vector<1xf32>
    %67 = vector.shape_cast %66 : vector<1xf32> to vector<1x1xf32>
    %68 = vector.broadcast %67 : vector<1x1xf32> to vector<16x1xf32>
    %69 = arith.subf %61, %68 : vector<16x1xf32>
    %70 = math.exp %69 : vector<16x1xf32>
    %71 = arith.truncf %70 : vector<16x1xf32> to vector<16x1xbf16>
    %cst_63 = arith.constant dense<0.000000e+00> : vector<8x1xf32>
    %72 = tpu.matmul %22, %71, %cst_63 {dimension_numbers = #tpu.dot_dimension_numbers<[1], [0], [0], [1], [0, 0, 1, 1], [], []>} : vector<8x16xbf16>, vector<16x1xbf16>, vector<8x1xf32> -> vector<8x1xf32>
    %73 = arith.truncf %72 : vector<8x1xf32> to vector<8x1xbf16>
    %cst_64 = arith.constant dense<0.000000e+00> : vector<16x1xf32>
    %74 = tpu.matmul %23, %73, %cst_64 {dimension_numbers = #tpu.dot_dimension_numbers<[1], [0], [0], [1], [0, 0, 1, 1], [], []>} : vector<16x8xbf16>, vector<8x1xbf16>, vector<16x1xf32> -> vector<16x1xf32>
    %cst_65 = arith.constant 1.000000e-30 : f32
    %75 = vector.broadcast %cst_65 : f32 to vector<16x1xf32>
    %76 = arith.maximumf %74, %75 : vector<16x1xf32>
    %77 = tpu.reciprocal %76 {approx = true} : vector<16x1xf32> -> vector<16x1xf32>
    %78 = arith.mulf %70, %77 : vector<16x1xf32>
    %79 = vector.broadcast %78 : vector<16x1xf32> to vector<16x32xf32>
    %80 = arith.mulf %79, %65 : vector<16x32xf32>
    %81 = arith.truncf %80 : vector<16x32xf32> to vector<16x32xbf16>
    %cst_66 = arith.constant dense<0.000000e+00> : vector<8x32xf32>
    %82 = tpu.matmul %22, %81, %cst_66 {dimension_numbers = #tpu.dot_dimension_numbers<[1], [0], [0], [1], [0, 0, 1, 1], [], []>} : vector<8x16xbf16>, vector<16x32xbf16>, vector<8x32xf32> -> vector<8x32xf32>
    %cst_67 = arith.constant 0.000000e+00 : f32
    %83 = vector.broadcast %cst_67 : f32 to vector<8x32xf32>
    %84 = arith.cmpf ogt, %82, %83 : vector<8x32xf32>
    %85 = math.exp %82 : vector<8x32xf32>
    %cst_68 = arith.constant 1.000000e+00 : f32
    %86 = vector.broadcast %cst_68 : f32 to vector<8x32xf32>
    %87 = arith.subf %85, %86 : vector<8x32xf32>
    %88 = arith.select %84, %82, %87 : vector<8x32xi1>, vector<8x32xf32>
    %89 = arith.truncf %88 : vector<8x32xf32> to vector<8x32xbf16>
    %cst_69 = arith.constant dense<0.000000e+00> : vector<8x32xf32>
    %90 = tpu.matmul %89, %10, %cst_69 {dimension_numbers = #tpu.dot_dimension_numbers<[1], [0], [0], [1], [0, 0, 1, 1], [], []>} : vector<8x32xbf16>, vector<32x32xbf16>, vector<8x32xf32> -> vector<8x32xf32>
    %91 = arith.truncf %33 : vector<8x32xf32> to vector<8x32xbf16>
    %cst_70 = arith.constant dense<0.000000e+00> : vector<8x32xf32>
    %92 = tpu.matmul %91, %13, %cst_70 {dimension_numbers = #tpu.dot_dimension_numbers<[1], [0], [0], [1], [0, 0, 1, 1], [], []>} : vector<8x32xbf16>, vector<32x32xbf16>, vector<8x32xf32> -> vector<8x32xf32>
    %93 = arith.addf %90, %92 : vector<8x32xf32>
    %94 = vector.broadcast %16 : vector<1x32xf32> to vector<8x32xf32>
    %95 = arith.addf %93, %94 : vector<8x32xf32>
    %96 = arith.negf %95 : vector<8x32xf32>
    %97 = math.exp %96 : vector<8x32xf32>
    %cst_71 = arith.constant 1.000000e+00 : f32
    %98 = vector.broadcast %cst_71 : f32 to vector<8x32xf32>
    %99 = arith.addf %98, %97 : vector<8x32xf32>
    %100 = arith.divf %98, %99 : vector<8x32xf32>
    %101 = arith.truncf %88 : vector<8x32xf32> to vector<8x32xbf16>
    %cst_72 = arith.constant dense<0.000000e+00> : vector<8x32xf32>
    %102 = tpu.matmul %101, %11, %cst_72 {dimension_numbers = #tpu.dot_dimension_numbers<[1], [0], [0], [1], [0, 0, 1, 1], [], []>} : vector<8x32xbf16>, vector<32x32xbf16>, vector<8x32xf32> -> vector<8x32xf32>
    %103 = arith.truncf %33 : vector<8x32xf32> to vector<8x32xbf16>
    %cst_73 = arith.constant dense<0.000000e+00> : vector<8x32xf32>
    %104 = tpu.matmul %103, %14, %cst_73 {dimension_numbers = #tpu.dot_dimension_numbers<[1], [0], [0], [1], [0, 0, 1, 1], [], []>} : vector<8x32xbf16>, vector<32x32xbf16>, vector<8x32xf32> -> vector<8x32xf32>
    %105 = arith.addf %102, %104 : vector<8x32xf32>
    %106 = vector.broadcast %17 : vector<1x32xf32> to vector<8x32xf32>
    %107 = arith.addf %105, %106 : vector<8x32xf32>
    %108 = arith.negf %107 : vector<8x32xf32>
    %109 = math.exp %108 : vector<8x32xf32>
    %cst_74 = arith.constant 1.000000e+00 : f32
    %110 = vector.broadcast %cst_74 : f32 to vector<8x32xf32>
    %111 = arith.addf %110, %109 : vector<8x32xf32>
    %112 = arith.divf %110, %111 : vector<8x32xf32>
    %113 = arith.truncf %88 : vector<8x32xf32> to vector<8x32xbf16>
    %cst_75 = arith.constant dense<0.000000e+00> : vector<8x32xf32>
    %114 = tpu.matmul %113, %12, %cst_75 {dimension_numbers = #tpu.dot_dimension_numbers<[1], [0], [0], [1], [0, 0, 1, 1], [], []>} : vector<8x32xbf16>, vector<32x32xbf16>, vector<8x32xf32> -> vector<8x32xf32>
    %115 = vector.broadcast %18 : vector<1x32xf32> to vector<8x32xf32>
    %116 = arith.addf %114, %115 : vector<8x32xf32>
    %117 = arith.truncf %33 : vector<8x32xf32> to vector<8x32xbf16>
    %cst_76 = arith.constant dense<0.000000e+00> : vector<8x32xf32>
    %118 = tpu.matmul %117, %15, %cst_76 {dimension_numbers = #tpu.dot_dimension_numbers<[1], [0], [0], [1], [0, 0, 1, 1], [], []>} : vector<8x32xbf16>, vector<32x32xbf16>, vector<8x32xf32> -> vector<8x32xf32>
    %119 = vector.broadcast %19 : vector<1x32xf32> to vector<8x32xf32>
    %120 = arith.addf %118, %119 : vector<8x32xf32>
    %121 = arith.mulf %100, %120 : vector<8x32xf32>
    %122 = arith.addf %116, %121 : vector<8x32xf32>
    %123 = math.tanh %122 : vector<8x32xf32>
    %cst_77 = arith.constant 1.000000e+00 : f32
    %124 = vector.broadcast %cst_77 : f32 to vector<8x32xf32>
    %125 = arith.subf %124, %112 : vector<8x32xf32>
    %126 = arith.mulf %125, %123 : vector<8x32xf32>
    %127 = arith.mulf %112, %33 : vector<8x32xf32>
    %128 = arith.addf %126, %127 : vector<8x32xf32>
    %cst_78 = arith.constant 0.000000e+00 : f32
    %129 = vector.broadcast %cst_78 : f32 to vector<8x32xf32>
    %130 = arith.maximumf %128, %129 : vector<8x32xf32>
    %c0_79 = arith.constant 0 : index
    %c0_80 = arith.constant 0 : index
    %131 = vector.load %arg25[%c0_79, %c0_80] : memref<8x32xf32, #tpu.memory_space<vmem>>, vector<8x32xf32>
    tpu.vector_store %arg25[%c0_79, %c0_80], %130 {strides = array<i32>} : memref<8x32xf32, #tpu.memory_space<vmem>>, vector<8x32xf32>,
    return
  }
}

module attributes {stable_mosaic.version = 11 : i64} {
  func.func @_gnn_layer_kernel(%arg0: memref<8x32xf32, #tpu.memory_space<vmem>>, %arg1: memref<8x16xbf16, #tpu.memory_space<vmem>>, %arg2: memref<16x8xbf16, #tpu.memory_space<vmem>>, %arg3: memref<16x8xbf16, #tpu.memory_space<vmem>>, %arg4: memref<32x1xbf16, #tpu.memory_space<vmem>>, %arg5: memref<32x1xbf16, #tpu.memory_space<vmem>>, %arg6: memref<1x1xf32, #tpu.memory_space<vmem>>, %arg7: memref<32x32xbf16, #tpu.memory_space<vmem>>, %arg8: memref<1x32xf32, #tpu.memory_space<vmem>>, %arg9: memref<1x32xf32, #tpu.memory_space<vmem>>, %arg10: memref<1x32xf32, #tpu.memory_space<vmem>>, %arg11: memref<32x32xbf16, #tpu.memory_space<vmem>>, %arg12: memref<32x32xbf16, #tpu.memory_space<vmem>>, %arg13: memref<32x32xbf16, #tpu.memory_space<vmem>>, %arg14: memref<32x32xbf16, #tpu.memory_space<vmem>>, %arg15: memref<32x32xbf16, #tpu.memory_space<vmem>>, %arg16: memref<32x32xbf16, #tpu.memory_space<vmem>>, %arg17: memref<1x32xf32, #tpu.memory_space<vmem>>, %arg18: memref<1x32xf32, #tpu.memory_space<vmem>>, %arg19: memref<1x32xf32, #tpu.memory_space<vmem>>, %arg20: memref<1x32xf32, #tpu.memory_space<vmem>>, %arg21: memref<8x32xf32, #tpu.memory_space<vmem>>) attributes {dimension_semantics = [], scalar_prefetch = 0 : i64, scratch_operands = 0 : i64, tpu.core_type = #tpu.core_type<tc>} {
    %c0 = arith.constant 0 : index
    %c0_0 = arith.constant 0 : index
    %0 = vector.load %arg4[%c0, %c0_0] : memref<32x1xbf16, #tpu.memory_space<vmem>>, vector<32x1xbf16>
    %c0_1 = arith.constant 0 : index
    %c0_2 = arith.constant 0 : index
    %1 = vector.load %arg5[%c0_1, %c0_2] : memref<32x1xbf16, #tpu.memory_space<vmem>>, vector<32x1xbf16>
    %c0_3 = arith.constant 0 : index
    %c0_4 = arith.constant 0 : index
    %2 = vector.load %arg6[%c0_3, %c0_4] : memref<1x1xf32, #tpu.memory_space<vmem>>, vector<1x1xf32>
    %c0_5 = arith.constant 0 : index
    %c0_6 = arith.constant 0 : index
    %3 = vector.load %arg7[%c0_5, %c0_6] : memref<32x32xbf16, #tpu.memory_space<vmem>>, vector<32x32xbf16>
    %c0_7 = arith.constant 0 : index
    %c0_8 = arith.constant 0 : index
    %4 = vector.load %arg8[%c0_7, %c0_8] : memref<1x32xf32, #tpu.memory_space<vmem>>, vector<1x32xf32>
    %c0_9 = arith.constant 0 : index
    %c0_10 = arith.constant 0 : index
    %5 = vector.load %arg9[%c0_9, %c0_10] : memref<1x32xf32, #tpu.memory_space<vmem>>, vector<1x32xf32>
    %c0_11 = arith.constant 0 : index
    %c0_12 = arith.constant 0 : index
    %6 = vector.load %arg10[%c0_11, %c0_12] : memref<1x32xf32, #tpu.memory_space<vmem>>, vector<1x32xf32>
    %c0_13 = arith.constant 0 : index
    %c0_14 = arith.constant 0 : index
    %7 = vector.load %arg11[%c0_13, %c0_14] : memref<32x32xbf16, #tpu.memory_space<vmem>>, vector<32x32xbf16>
    %c0_15 = arith.constant 0 : index
    %c0_16 = arith.constant 0 : index
    %8 = vector.load %arg12[%c0_15, %c0_16] : memref<32x32xbf16, #tpu.memory_space<vmem>>, vector<32x32xbf16>
    %c0_17 = arith.constant 0 : index
    %c0_18 = arith.constant 0 : index
    %9 = vector.load %arg13[%c0_17, %c0_18] : memref<32x32xbf16, #tpu.memory_space<vmem>>, vector<32x32xbf16>
    %c0_19 = arith.constant 0 : index
    %c0_20 = arith.constant 0 : index
    %10 = vector.load %arg14[%c0_19, %c0_20] : memref<32x32xbf16, #tpu.memory_space<vmem>>, vector<32x32xbf16>
    %c0_21 = arith.constant 0 : index
    %c0_22 = arith.constant 0 : index
    %11 = vector.load %arg15[%c0_21, %c0_22] : memref<32x32xbf16, #tpu.memory_space<vmem>>, vector<32x32xbf16>
    %c0_23 = arith.constant 0 : index
    %c0_24 = arith.constant 0 : index
    %12 = vector.load %arg16[%c0_23, %c0_24] : memref<32x32xbf16, #tpu.memory_space<vmem>>, vector<32x32xbf16>
    %c0_25 = arith.constant 0 : index
    %c0_26 = arith.constant 0 : index
    %13 = vector.load %arg17[%c0_25, %c0_26] : memref<1x32xf32, #tpu.memory_space<vmem>>, vector<1x32xf32>
    %c0_27 = arith.constant 0 : index
    %c0_28 = arith.constant 0 : index
    %14 = vector.load %arg18[%c0_27, %c0_28] : memref<1x32xf32, #tpu.memory_space<vmem>>, vector<1x32xf32>
    %c0_29 = arith.constant 0 : index
    %c0_30 = arith.constant 0 : index
    %15 = vector.load %arg19[%c0_29, %c0_30] : memref<1x32xf32, #tpu.memory_space<vmem>>, vector<1x32xf32>
    %c0_31 = arith.constant 0 : index
    %c0_32 = arith.constant 0 : index
    %16 = vector.load %arg20[%c0_31, %c0_32] : memref<1x32xf32, #tpu.memory_space<vmem>>, vector<1x32xf32>
    %c0_33 = arith.constant 0 : index
    %c0_34 = arith.constant 0 : index
    %17 = vector.load %arg0[%c0_33, %c0_34] : memref<8x32xf32, #tpu.memory_space<vmem>>, vector<8x32xf32>
    %c0_35 = arith.constant 0 : index
    %c0_36 = arith.constant 0 : index
    %18 = vector.load %arg1[%c0_35, %c0_36] : memref<8x16xbf16, #tpu.memory_space<vmem>>, vector<8x16xbf16>
    %c0_37 = arith.constant 0 : index
    %c0_38 = arith.constant 0 : index
    %19 = vector.load %arg2[%c0_37, %c0_38] : memref<16x8xbf16, #tpu.memory_space<vmem>>, vector<16x8xbf16>
    %c0_39 = arith.constant 0 : index
    %c0_40 = arith.constant 0 : index
    %20 = vector.load %arg3[%c0_39, %c0_40] : memref<16x8xbf16, #tpu.memory_space<vmem>>, vector<16x8xbf16>
    %21 = arith.truncf %17 : vector<8x32xf32> to vector<8x32xbf16>
    %cst = arith.constant dense<0.000000e+00> : vector<8x1xf32>
    %22 = tpu.matmul %21, %0, %cst {dimension_numbers = #tpu.dot_dimension_numbers<[1], [0], [0], [1], [0, 0, 1, 1], [], []>} : vector<8x32xbf16>, vector<32x1xbf16>, vector<8x1xf32> -> vector<8x1xf32>
    %23 = arith.truncf %22 : vector<8x1xf32> to vector<8x1xbf16>
    %cst_41 = arith.constant dense<0.000000e+00> : vector<16x1xf32>
    %24 = tpu.matmul %19, %23, %cst_41 {dimension_numbers = #tpu.dot_dimension_numbers<[1], [0], [0], [1], [0, 0, 1, 1], [], []>} : vector<16x8xbf16>, vector<8x1xbf16>, vector<16x1xf32> -> vector<16x1xf32>
    %25 = arith.truncf %17 : vector<8x32xf32> to vector<8x32xbf16>
    %cst_42 = arith.constant dense<0.000000e+00> : vector<8x1xf32>
    %26 = tpu.matmul %25, %1, %cst_42 {dimension_numbers = #tpu.dot_dimension_numbers<[1], [0], [0], [1], [0, 0, 1, 1], [], []>} : vector<8x32xbf16>, vector<32x1xbf16>, vector<8x1xf32> -> vector<8x1xf32>
    %27 = arith.truncf %26 : vector<8x1xf32> to vector<8x1xbf16>
    %cst_43 = arith.constant dense<0.000000e+00> : vector<16x1xf32>
    %28 = tpu.matmul %20, %27, %cst_43 {dimension_numbers = #tpu.dot_dimension_numbers<[1], [0], [0], [1], [0, 0, 1, 1], [], []>} : vector<16x8xbf16>, vector<8x1xbf16>, vector<16x1xf32> -> vector<16x1xf32>
    %29 = arith.addf %24, %28 : vector<16x1xf32>
    %30 = vector.broadcast %2 : vector<1x1xf32> to vector<16x1xf32>
    %31 = arith.addf %29, %30 : vector<16x1xf32>
    %cst_44 = arith.constant 0.000000e+00 : f32
    %32 = vector.broadcast %cst_44 : f32 to vector<16x1xf32>
    %33 = arith.cmpf oge, %31, %32 : vector<16x1xf32>
    %cst_45 = arith.constant 0.00999999977 : f32
    %34 = vector.broadcast %cst_45 : f32 to vector<16x1xf32>
    %35 = arith.mulf %34, %31 : vector<16x1xf32>
    %36 = arith.select %33, %31, %35 : vector<16x1xi1>, vector<16x1xf32>
    %37 = arith.truncf %17 : vector<8x32xf32> to vector<8x32xbf16>
    %cst_46 = arith.constant dense<0.000000e+00> : vector<8x32xf32>
    %38 = tpu.matmul %37, %3, %cst_46 {dimension_numbers = #tpu.dot_dimension_numbers<[1], [0], [0], [1], [0, 0, 1, 1], [], []>} : vector<8x32xbf16>, vector<32x32xbf16>, vector<8x32xf32> -> vector<8x32xf32>
    %39 = vector.broadcast %4 : vector<1x32xf32> to vector<8x32xf32>
    %40 = arith.addf %38, %39 : vector<8x32xf32>
    %41 = arith.truncf %40 : vector<8x32xf32> to vector<8x32xbf16>
    %cst_47 = arith.constant dense<0.000000e+00> : vector<16x32xf32>
    %42 = tpu.matmul %20, %41, %cst_47 {dimension_numbers = #tpu.dot_dimension_numbers<[1], [0], [0], [1], [0, 0, 1, 1], [], []>} : vector<16x8xbf16>, vector<8x32xbf16>, vector<16x32xf32> -> vector<16x32xf32>
    %cst_48 = arith.constant dense<0xFF800000> : vector<1xf32>
    %43 = vector.multi_reduction <maximumf>, %36, %cst_48 [0] : vector<16x1xf32> to vector<1xf32>
    %44 = vector.shape_cast %43 : vector<1xf32> to vector<1x1xf32>
    %45 = vector.broadcast %44 : vector<1x1xf32> to vector<16x1xf32>
    %46 = arith.subf %36, %45 : vector<16x1xf32>
    %47 = math.exp %46 : vector<16x1xf32>
    %48 = arith.truncf %47 : vector<16x1xf32> to vector<16x1xbf16>
    %cst_49 = arith.constant dense<0.000000e+00> : vector<8x1xf32>
    %49 = tpu.matmul %18, %48, %cst_49 {dimension_numbers = #tpu.dot_dimension_numbers<[1], [0], [0], [1], [0, 0, 1, 1], [], []>} : vector<8x16xbf16>, vector<16x1xbf16>, vector<8x1xf32> -> vector<8x1xf32>
    %50 = arith.truncf %49 : vector<8x1xf32> to vector<8x1xbf16>
    %cst_50 = arith.constant dense<0.000000e+00> : vector<16x1xf32>
    %51 = tpu.matmul %19, %50, %cst_50 {dimension_numbers = #tpu.dot_dimension_numbers<[1], [0], [0], [1], [0, 0, 1, 1], [], []>} : vector<16x8xbf16>, vector<8x1xbf16>, vector<16x1xf32> -> vector<16x1xf32>
    %cst_51 = arith.constant 1.000000e-30 : f32
    %52 = vector.broadcast %cst_51 : f32 to vector<16x1xf32>
    %53 = arith.maximumf %51, %52 : vector<16x1xf32>
    %54 = tpu.reciprocal %53 {approx = true} : vector<16x1xf32> -> vector<16x1xf32>
    %55 = arith.mulf %47, %54 : vector<16x1xf32>
    %56 = vector.broadcast %55 : vector<16x1xf32> to vector<16x32xf32>
    %57 = arith.mulf %56, %42 : vector<16x32xf32>
    %58 = arith.truncf %57 : vector<16x32xf32> to vector<16x32xbf16>
    %cst_52 = arith.constant dense<0.000000e+00> : vector<8x32xf32>
    %59 = tpu.matmul %18, %58, %cst_52 {dimension_numbers = #tpu.dot_dimension_numbers<[1], [0], [0], [1], [0, 0, 1, 1], [], []>} : vector<8x16xbf16>, vector<16x32xbf16>, vector<8x32xf32> -> vector<8x32xf32>
    %cst_53 = arith.constant 0.000000e+00 : f32
    %60 = vector.broadcast %cst_53 : f32 to vector<8x32xf32>
    %61 = arith.cmpf ogt, %59, %60 : vector<8x32xf32>
    %62 = math.exp %59 : vector<8x32xf32>
    %cst_54 = arith.constant 1.000000e+00 : f32
    %63 = vector.broadcast %cst_54 : f32 to vector<8x32xf32>
    %64 = arith.subf %62, %63 : vector<8x32xf32>
    %65 = arith.select %61, %59, %64 : vector<8x32xi1>, vector<8x32xf32>
    %66 = arith.truncf %65 : vector<8x32xf32> to vector<8x32xbf16>
    %cst_55 = arith.constant dense<0.000000e+00> : vector<8x32xf32>
    %67 = tpu.matmul %66, %7, %cst_55 {dimension_numbers = #tpu.dot_dimension_numbers<[1], [0], [0], [1], [0, 0, 1, 1], [], []>} : vector<8x32xbf16>, vector<32x32xbf16>, vector<8x32xf32> -> vector<8x32xf32>
    %68 = arith.truncf %17 : vector<8x32xf32> to vector<8x32xbf16>
    %cst_56 = arith.constant dense<0.000000e+00> : vector<8x32xf32>
    %69 = tpu.matmul %68, %10, %cst_56 {dimension_numbers = #tpu.dot_dimension_numbers<[1], [0], [0], [1], [0, 0, 1, 1], [], []>} : vector<8x32xbf16>, vector<32x32xbf16>, vector<8x32xf32> -> vector<8x32xf32>
    %70 = arith.addf %67, %69 : vector<8x32xf32>
    %71 = vector.broadcast %13 : vector<1x32xf32> to vector<8x32xf32>
    %72 = arith.addf %70, %71 : vector<8x32xf32>
    %73 = arith.negf %72 : vector<8x32xf32>
    %74 = math.exp %73 : vector<8x32xf32>
    %cst_57 = arith.constant 1.000000e+00 : f32
    %75 = vector.broadcast %cst_57 : f32 to vector<8x32xf32>
    %76 = arith.addf %75, %74 : vector<8x32xf32>
    %77 = arith.divf %75, %76 : vector<8x32xf32>
    %78 = arith.truncf %65 : vector<8x32xf32> to vector<8x32xbf16>
    %cst_58 = arith.constant dense<0.000000e+00> : vector<8x32xf32>
    %79 = tpu.matmul %78, %8, %cst_58 {dimension_numbers = #tpu.dot_dimension_numbers<[1], [0], [0], [1], [0, 0, 1, 1], [], []>} : vector<8x32xbf16>, vector<32x32xbf16>, vector<8x32xf32> -> vector<8x32xf32>
    %80 = arith.truncf %17 : vector<8x32xf32> to vector<8x32xbf16>
    %cst_59 = arith.constant dense<0.000000e+00> : vector<8x32xf32>
    %81 = tpu.matmul %80, %11, %cst_59 {dimension_numbers = #tpu.dot_dimension_numbers<[1], [0], [0], [1], [0, 0, 1, 1], [], []>} : vector<8x32xbf16>, vector<32x32xbf16>, vector<8x32xf32> -> vector<8x32xf32>
    %82 = arith.addf %79, %81 : vector<8x32xf32>
    %83 = vector.broadcast %14 : vector<1x32xf32> to vector<8x32xf32>
    %84 = arith.addf %82, %83 : vector<8x32xf32>
    %85 = arith.negf %84 : vector<8x32xf32>
    %86 = math.exp %85 : vector<8x32xf32>
    %cst_60 = arith.constant 1.000000e+00 : f32
    %87 = vector.broadcast %cst_60 : f32 to vector<8x32xf32>
    %88 = arith.addf %87, %86 : vector<8x32xf32>
    %89 = arith.divf %87, %88 : vector<8x32xf32>
    %90 = arith.truncf %65 : vector<8x32xf32> to vector<8x32xbf16>
    %cst_61 = arith.constant dense<0.000000e+00> : vector<8x32xf32>
    %91 = tpu.matmul %90, %9, %cst_61 {dimension_numbers = #tpu.dot_dimension_numbers<[1], [0], [0], [1], [0, 0, 1, 1], [], []>} : vector<8x32xbf16>, vector<32x32xbf16>, vector<8x32xf32> -> vector<8x32xf32>
    %92 = vector.broadcast %15 : vector<1x32xf32> to vector<8x32xf32>
    %93 = arith.addf %91, %92 : vector<8x32xf32>
    %94 = arith.truncf %17 : vector<8x32xf32> to vector<8x32xbf16>
    %cst_62 = arith.constant dense<0.000000e+00> : vector<8x32xf32>
    %95 = tpu.matmul %94, %12, %cst_62 {dimension_numbers = #tpu.dot_dimension_numbers<[1], [0], [0], [1], [0, 0, 1, 1], [], []>} : vector<8x32xbf16>, vector<32x32xbf16>, vector<8x32xf32> -> vector<8x32xf32>
    %96 = vector.broadcast %16 : vector<1x32xf32> to vector<8x32xf32>
    %97 = arith.addf %95, %96 : vector<8x32xf32>
    %98 = arith.mulf %77, %97 : vector<8x32xf32>
    %99 = arith.addf %93, %98 : vector<8x32xf32>
    %100 = math.tanh %99 : vector<8x32xf32>
    %cst_63 = arith.constant 1.000000e+00 : f32
    %101 = vector.broadcast %cst_63 : f32 to vector<8x32xf32>
    %102 = arith.subf %101, %89 : vector<8x32xf32>
    %103 = arith.mulf %102, %100 : vector<8x32xf32>
    %104 = arith.mulf %89, %17 : vector<8x32xf32>
    %105 = arith.addf %103, %104 : vector<8x32xf32>
    %cst_64 = arith.constant 0.000000e+00 : f32
    %106 = vector.broadcast %cst_64 : f32 to vector<8x32xf32>
    %107 = arith.maximumf %105, %106 : vector<8x32xf32>
    %108 = vector.broadcast %5 : vector<1x32xf32> to vector<8x32xf32>
    %109 = arith.mulf %107, %108 : vector<8x32xf32>
    %110 = vector.broadcast %6 : vector<1x32xf32> to vector<8x32xf32>
    %111 = arith.addf %109, %110 : vector<8x32xf32>
    %c0_65 = arith.constant 0 : index
    %c0_66 = arith.constant 0 : index
    %112 = vector.load %arg21[%c0_65, %c0_66] : memref<8x32xf32, #tpu.memory_space<vmem>>, vector<8x32xf32>
    tpu.vector_store %arg21[%c0_65, %c0_66], %111 {strides = array<i32>} : memref<8x32xf32, #tpu.memory_space<vmem>>, vector<8x32xf32>,
    return
  }
}

module attributes {stable_mosaic.version = 11 : i64} {
  func.func @_edge_conv_readout_kernel(%arg0: memref<8x32xf32, #tpu.memory_space<vmem>>, %arg1: memref<12x8xbf16, #tpu.memory_space<vmem>>, %arg2: memref<12x8xbf16, #tpu.memory_space<vmem>>, %arg3: memref<12x1xf32, #tpu.memory_space<vmem>>, %arg4: memref<12x2xf32, #tpu.memory_space<vmem>>, %arg5: memref<2x12xbf16, #tpu.memory_space<vmem>>, %arg6: memref<32x32xbf16, #tpu.memory_space<vmem>>, %arg7: memref<32x32xbf16, #tpu.memory_space<vmem>>, %arg8: memref<1x32xf32, #tpu.memory_space<vmem>>, %arg9: memref<1x32xf32, #tpu.memory_space<vmem>>, %arg10: memref<1x32xf32, #tpu.memory_space<vmem>>, %arg11: memref<1x32xf32, #tpu.memory_space<vmem>>, %arg12: memref<32x1xbf16, #tpu.memory_space<vmem>>, %arg13: memref<1x1xf32, #tpu.memory_space<vmem>>, %arg14: memref<2x32xf32, #tpu.memory_space<vmem>>, %arg15: memref<2x32xf32, #tpu.memory_space<vmem>>) attributes {dimension_semantics = [], scalar_prefetch = 0 : i64, scratch_operands = 0 : i64, tpu.core_type = #tpu.core_type<tc>} {
    %c0 = arith.constant 0 : index
    %c0_0 = arith.constant 0 : index
    %0 = vector.load %arg6[%c0, %c0_0] : memref<32x32xbf16, #tpu.memory_space<vmem>>, vector<32x32xbf16>
    %c0_1 = arith.constant 0 : index
    %c0_2 = arith.constant 0 : index
    %1 = vector.load %arg7[%c0_1, %c0_2] : memref<32x32xbf16, #tpu.memory_space<vmem>>, vector<32x32xbf16>
    %c0_3 = arith.constant 0 : index
    %c0_4 = arith.constant 0 : index
    %2 = vector.load %arg8[%c0_3, %c0_4] : memref<1x32xf32, #tpu.memory_space<vmem>>, vector<1x32xf32>
    %c0_5 = arith.constant 0 : index
    %c0_6 = arith.constant 0 : index
    %3 = vector.load %arg9[%c0_5, %c0_6] : memref<1x32xf32, #tpu.memory_space<vmem>>, vector<1x32xf32>
    %c0_7 = arith.constant 0 : index
    %c0_8 = arith.constant 0 : index
    %4 = vector.load %arg10[%c0_7, %c0_8] : memref<1x32xf32, #tpu.memory_space<vmem>>, vector<1x32xf32>
    %c0_9 = arith.constant 0 : index
    %c0_10 = arith.constant 0 : index
    %5 = vector.load %arg11[%c0_9, %c0_10] : memref<1x32xf32, #tpu.memory_space<vmem>>, vector<1x32xf32>
    %c0_11 = arith.constant 0 : index
    %c0_12 = arith.constant 0 : index
    %6 = vector.load %arg12[%c0_11, %c0_12] : memref<32x1xbf16, #tpu.memory_space<vmem>>, vector<32x1xbf16>
    %c0_13 = arith.constant 0 : index
    %c0_14 = arith.constant 0 : index
    %7 = vector.load %arg13[%c0_13, %c0_14] : memref<1x1xf32, #tpu.memory_space<vmem>>, vector<1x1xf32>
    %c0_15 = arith.constant 0 : index
    %c0_16 = arith.constant 0 : index
    %8 = vector.load %arg0[%c0_15, %c0_16] : memref<8x32xf32, #tpu.memory_space<vmem>>, vector<8x32xf32>
    %c0_17 = arith.constant 0 : index
    %c0_18 = arith.constant 0 : index
    %9 = vector.load %arg1[%c0_17, %c0_18] : memref<12x8xbf16, #tpu.memory_space<vmem>>, vector<12x8xbf16>
    %10 = arith.truncf %8 : vector<8x32xf32> to vector<8x32xbf16>
    %cst = arith.constant dense<0.000000e+00> : vector<8x32xf32>
    %11 = tpu.matmul %10, %0, %cst {dimension_numbers = #tpu.dot_dimension_numbers<[1], [0], [0], [1], [0, 0, 1, 1], [], []>} : vector<8x32xbf16>, vector<32x32xbf16>, vector<8x32xf32> -> vector<8x32xf32>
    %12 = arith.truncf %11 : vector<8x32xf32> to vector<8x32xbf16>
    %cst_19 = arith.constant dense<0.000000e+00> : vector<12x32xf32>
    %13 = tpu.matmul %9, %12, %cst_19 {dimension_numbers = #tpu.dot_dimension_numbers<[1], [0], [0], [1], [0, 0, 1, 1], [], []>} : vector<12x8xbf16>, vector<8x32xbf16>, vector<12x32xf32> -> vector<12x32xf32>
    %c0_20 = arith.constant 0 : index
    %c0_21 = arith.constant 0 : index
    %14 = vector.load %arg2[%c0_20, %c0_21] : memref<12x8xbf16, #tpu.memory_space<vmem>>, vector<12x8xbf16>
    %15 = arith.truncf %8 : vector<8x32xf32> to vector<8x32xbf16>
    %cst_22 = arith.constant dense<0.000000e+00> : vector<8x32xf32>
    %16 = tpu.matmul %15, %1, %cst_22 {dimension_numbers = #tpu.dot_dimension_numbers<[1], [0], [0], [1], [0, 0, 1, 1], [], []>} : vector<8x32xbf16>, vector<32x32xbf16>, vector<8x32xf32> -> vector<8x32xf32>
    %17 = arith.truncf %16 : vector<8x32xf32> to vector<8x32xbf16>
    %cst_23 = arith.constant dense<0.000000e+00> : vector<12x32xf32>
    %18 = tpu.matmul %14, %17, %cst_23 {dimension_numbers = #tpu.dot_dimension_numbers<[1], [0], [0], [1], [0, 0, 1, 1], [], []>} : vector<12x8xbf16>, vector<8x32xbf16>, vector<12x32xf32> -> vector<12x32xf32>
    %19 = arith.addf %13, %18 : vector<12x32xf32>
    %c0_24 = arith.constant 0 : index
    %c0_25 = arith.constant 0 : index
    %20 = vector.load %arg3[%c0_24, %c0_25] : memref<12x1xf32, #tpu.memory_space<vmem>>, vector<12x1xf32>
    %21 = vector.broadcast %20 : vector<12x1xf32> to vector<12x32xf32>
    %22 = vector.broadcast %2 : vector<1x32xf32> to vector<12x32xf32>
    %23 = arith.mulf %21, %22 : vector<12x32xf32>
    %24 = arith.addf %19, %23 : vector<12x32xf32>
    %25 = vector.broadcast %3 : vector<1x32xf32> to vector<12x32xf32>
    %26 = arith.addf %24, %25 : vector<12x32xf32>
    %cst_26 = arith.constant 0.000000e+00 : f32
    %27 = vector.broadcast %cst_26 : f32 to vector<12x32xf32>
    %28 = arith.cmpf oge, %26, %27 : vector<12x32xf32>
    %cst_27 = arith.constant 0.00999999977 : f32
    %29 = vector.broadcast %cst_27 : f32 to vector<12x32xf32>
    %30 = arith.mulf %29, %26 : vector<12x32xf32>
    %31 = arith.select %28, %26, %30 : vector<12x32xi1>, vector<12x32xf32>
    %32 = vector.broadcast %4 : vector<1x32xf32> to vector<12x32xf32>
    %33 = arith.mulf %31, %32 : vector<12x32xf32>
    %34 = vector.broadcast %5 : vector<1x32xf32> to vector<12x32xf32>
    %35 = arith.addf %33, %34 : vector<12x32xf32>
    %36 = arith.truncf %35 : vector<12x32xf32> to vector<12x32xbf16>
    %cst_28 = arith.constant dense<0.000000e+00> : vector<12x1xf32>
    %37 = tpu.matmul %36, %6, %cst_28 {dimension_numbers = #tpu.dot_dimension_numbers<[1], [0], [0], [1], [0, 0, 1, 1], [], []>} : vector<12x32xbf16>, vector<32x1xbf16>, vector<12x1xf32> -> vector<12x1xf32>
    %38 = vector.broadcast %7 : vector<1x1xf32> to vector<12x1xf32>
    %39 = arith.addf %37, %38 : vector<12x1xf32>
    %40 = math.tanh %39 : vector<12x1xf32>
    %c0_29 = arith.constant 0 : index
    %c0_30 = arith.constant 0 : index
    %41 = vector.load %arg5[%c0_29, %c0_30] : memref<2x12xbf16, #tpu.memory_space<vmem>>, vector<2x12xbf16>
    %42 = vector.broadcast %40 : vector<12x1xf32> to vector<12x32xf32>
    %43 = arith.mulf %42, %35 : vector<12x32xf32>
    %44 = arith.truncf %43 : vector<12x32xf32> to vector<12x32xbf16>
    %cst_31 = arith.constant dense<0.000000e+00> : vector<2x32xf32>
    %45 = tpu.matmul %41, %44, %cst_31 {dimension_numbers = #tpu.dot_dimension_numbers<[1], [0], [0], [1], [0, 0, 1, 1], [], []>} : vector<2x12xbf16>, vector<12x32xbf16>, vector<2x32xf32> -> vector<2x32xf32>
    %c0_32 = arith.constant 0 : index
    %c0_33 = arith.constant 0 : index
    %46 = vector.load %arg14[%c0_32, %c0_33] : memref<2x32xf32, #tpu.memory_space<vmem>>, vector<2x32xf32>
    tpu.vector_store %arg14[%c0_32, %c0_33], %45 {strides = array<i32>} : memref<2x32xf32, #tpu.memory_space<vmem>>, vector<2x32xf32>,
    %c0_34 = arith.constant 0 : index
    %c0_35 = arith.constant 0 : index
    %47 = vector.load %arg4[%c0_34, %c0_35] : memref<12x2xf32, #tpu.memory_space<vmem>>, vector<12x2xf32>
    %48 = tpu.iota {dimensions = array<i32: 0>} : vector<2x32xi32>
    %cst_36 = arith.constant 0.000000e+00 : f32
    %49 = vector.broadcast %cst_36 : f32 to vector<2x32xf32>
    %50 = vector.extract_strided_slice %47 {offsets = [0, 0], sizes = [12, 1], strides = [1, 1]} : vector<12x2xf32> to vector<12x1xf32>
    %cst_37 = arith.constant 0.000000e+00 : f32
    %51 = vector.broadcast %cst_37 : f32 to vector<12x1xf32>
    %52 = arith.cmpf ogt, %50, %51 : vector<12x1xf32>
    %cst_38 = arith.constant -1.000000e+30 : f32
    %53 = vector.shape_cast %52 : vector<12x1xi1> to vector<12x1xi1>
    %54 = vector.broadcast %53 : vector<12x1xi1> to vector<12x32xi1>
    %55 = vector.broadcast %cst_38 : f32 to vector<12x32xf32>
    %56 = arith.select %54, %35, %55 : vector<12x32xi1>, vector<12x32xf32>
    %cst_39 = arith.constant dense<0xFF800000> : vector<32xf32>
    %57 = vector.multi_reduction <maximumf>, %56, %cst_39 [0] : vector<12x32xf32> to vector<32xf32>
    %58 = vector.shape_cast %57 : vector<32xf32> to vector<1x32xf32>
    %c0_i32 = arith.constant 0 : i32
    %59 = vector.broadcast %c0_i32 : i32 to vector<2x32xi32>
    %60 = arith.cmpi eq, %48, %59 : vector<2x32xi32>
    %61 = vector.shape_cast %58 : vector<1x32xf32> to vector<1x32xf32>
    %62 = vector.broadcast %61 : vector<1x32xf32> to vector<2x32xf32>
    %63 = arith.select %60, %62, %49 : vector<2x32xi1>, vector<2x32xf32>
    %64 = vector.extract_strided_slice %47 {offsets = [0, 1], sizes = [12, 1], strides = [1, 1]} : vector<12x2xf32> to vector<12x1xf32>
    %cst_40 = arith.constant 0.000000e+00 : f32
    %65 = vector.broadcast %cst_40 : f32 to vector<12x1xf32>
    %66 = arith.cmpf ogt, %64, %65 : vector<12x1xf32>
    %cst_41 = arith.constant -1.000000e+30 : f32
    %67 = vector.shape_cast %66 : vector<12x1xi1> to vector<12x1xi1>
    %68 = vector.broadcast %67 : vector<12x1xi1> to vector<12x32xi1>
    %69 = vector.broadcast %cst_41 : f32 to vector<12x32xf32>
    %70 = arith.select %68, %35, %69 : vector<12x32xi1>, vector<12x32xf32>
    %cst_42 = arith.constant dense<0xFF800000> : vector<32xf32>
    %71 = vector.multi_reduction <maximumf>, %70, %cst_42 [0] : vector<12x32xf32> to vector<32xf32>
    %72 = vector.shape_cast %71 : vector<32xf32> to vector<1x32xf32>
    %c1_i32 = arith.constant 1 : i32
    %73 = vector.broadcast %c1_i32 : i32 to vector<2x32xi32>
    %74 = arith.cmpi eq, %48, %73 : vector<2x32xi32>
    %75 = vector.shape_cast %72 : vector<1x32xf32> to vector<1x32xf32>
    %76 = vector.broadcast %75 : vector<1x32xf32> to vector<2x32xf32>
    %77 = arith.select %74, %76, %63 : vector<2x32xi1>, vector<2x32xf32>
    %c0_43 = arith.constant 0 : index
    %c0_44 = arith.constant 0 : index
    %78 = vector.load %arg15[%c0_43, %c0_44] : memref<2x32xf32, #tpu.memory_space<vmem>>, vector<2x32xf32>
    tpu.vector_store %arg15[%c0_43, %c0_44], %77 {strides = array<i32>} : memref<2x32xf32, #tpu.memory_space<vmem>>, vector<2x32xf32>,
    return
  }
}

module attributes {stable_mosaic.version = 11 : i64} {
  func.func @_fc_kernel(%arg0: memref<2x64xf32, #tpu.memory_space<vmem>>, %arg1: memref<64x32xbf16, #tpu.memory_space<vmem>>, %arg2: memref<1x32xf32, #tpu.memory_space<vmem>>, %arg3: memref<1x32xf32, #tpu.memory_space<vmem>>, %arg4: memref<1x32xf32, #tpu.memory_space<vmem>>, %arg5: memref<32x32xbf16, #tpu.memory_space<vmem>>, %arg6: memref<1x32xf32, #tpu.memory_space<vmem>>, %arg7: memref<1x32xf32, #tpu.memory_space<vmem>>, %arg8: memref<1x32xf32, #tpu.memory_space<vmem>>, %arg9: memref<32x1xbf16, #tpu.memory_space<vmem>>, %arg10: memref<1x1xf32, #tpu.memory_space<vmem>>, %arg11: memref<2x1xf32, #tpu.memory_space<vmem>>) attributes {dimension_semantics = [], scalar_prefetch = 0 : i64, scratch_operands = 0 : i64, tpu.core_type = #tpu.core_type<tc>} {
    %c0 = arith.constant 0 : index
    %c0_0 = arith.constant 0 : index
    %0 = vector.load %arg0[%c0, %c0_0] : memref<2x64xf32, #tpu.memory_space<vmem>>, vector<2x64xf32>
    %c0_1 = arith.constant 0 : index
    %c0_2 = arith.constant 0 : index
    %1 = vector.load %arg1[%c0_1, %c0_2] : memref<64x32xbf16, #tpu.memory_space<vmem>>, vector<64x32xbf16>
    %c0_3 = arith.constant 0 : index
    %c0_4 = arith.constant 0 : index
    %2 = vector.load %arg2[%c0_3, %c0_4] : memref<1x32xf32, #tpu.memory_space<vmem>>, vector<1x32xf32>
    %c0_5 = arith.constant 0 : index
    %c0_6 = arith.constant 0 : index
    %3 = vector.load %arg3[%c0_5, %c0_6] : memref<1x32xf32, #tpu.memory_space<vmem>>, vector<1x32xf32>
    %c0_7 = arith.constant 0 : index
    %c0_8 = arith.constant 0 : index
    %4 = vector.load %arg4[%c0_7, %c0_8] : memref<1x32xf32, #tpu.memory_space<vmem>>, vector<1x32xf32>
    %5 = arith.truncf %0 : vector<2x64xf32> to vector<2x64xbf16>
    %cst = arith.constant dense<0.000000e+00> : vector<2x32xf32>
    %6 = tpu.matmul %5, %1, %cst {dimension_numbers = #tpu.dot_dimension_numbers<[1], [0], [0], [1], [0, 0, 1, 1], [], []>} : vector<2x64xbf16>, vector<64x32xbf16>, vector<2x32xf32> -> vector<2x32xf32>
    %7 = vector.broadcast %2 : vector<1x32xf32> to vector<2x32xf32>
    %8 = arith.addf %6, %7 : vector<2x32xf32>
    %cst_9 = arith.constant 0.000000e+00 : f32
    %9 = vector.broadcast %cst_9 : f32 to vector<2x32xf32>
    %10 = arith.cmpf oge, %8, %9 : vector<2x32xf32>
    %cst_10 = arith.constant 0.00999999977 : f32
    %11 = vector.broadcast %cst_10 : f32 to vector<2x32xf32>
    %12 = arith.mulf %11, %8 : vector<2x32xf32>
    %13 = arith.select %10, %8, %12 : vector<2x32xi1>, vector<2x32xf32>
    %14 = vector.broadcast %3 : vector<1x32xf32> to vector<2x32xf32>
    %15 = arith.mulf %13, %14 : vector<2x32xf32>
    %16 = vector.broadcast %4 : vector<1x32xf32> to vector<2x32xf32>
    %17 = arith.addf %15, %16 : vector<2x32xf32>
    %c0_11 = arith.constant 0 : index
    %c0_12 = arith.constant 0 : index
    %18 = vector.load %arg5[%c0_11, %c0_12] : memref<32x32xbf16, #tpu.memory_space<vmem>>, vector<32x32xbf16>
    %c0_13 = arith.constant 0 : index
    %c0_14 = arith.constant 0 : index
    %19 = vector.load %arg6[%c0_13, %c0_14] : memref<1x32xf32, #tpu.memory_space<vmem>>, vector<1x32xf32>
    %c0_15 = arith.constant 0 : index
    %c0_16 = arith.constant 0 : index
    %20 = vector.load %arg7[%c0_15, %c0_16] : memref<1x32xf32, #tpu.memory_space<vmem>>, vector<1x32xf32>
    %c0_17 = arith.constant 0 : index
    %c0_18 = arith.constant 0 : index
    %21 = vector.load %arg8[%c0_17, %c0_18] : memref<1x32xf32, #tpu.memory_space<vmem>>, vector<1x32xf32>
    %22 = arith.truncf %17 : vector<2x32xf32> to vector<2x32xbf16>
    %cst_19 = arith.constant dense<0.000000e+00> : vector<2x32xf32>
    %23 = tpu.matmul %22, %18, %cst_19 {dimension_numbers = #tpu.dot_dimension_numbers<[1], [0], [0], [1], [0, 0, 1, 1], [], []>} : vector<2x32xbf16>, vector<32x32xbf16>, vector<2x32xf32> -> vector<2x32xf32>
    %24 = vector.broadcast %19 : vector<1x32xf32> to vector<2x32xf32>
    %25 = arith.addf %23, %24 : vector<2x32xf32>
    %cst_20 = arith.constant 0.000000e+00 : f32
    %26 = vector.broadcast %cst_20 : f32 to vector<2x32xf32>
    %27 = arith.cmpf oge, %25, %26 : vector<2x32xf32>
    %cst_21 = arith.constant 0.00999999977 : f32
    %28 = vector.broadcast %cst_21 : f32 to vector<2x32xf32>
    %29 = arith.mulf %28, %25 : vector<2x32xf32>
    %30 = arith.select %27, %25, %29 : vector<2x32xi1>, vector<2x32xf32>
    %31 = vector.broadcast %20 : vector<1x32xf32> to vector<2x32xf32>
    %32 = arith.mulf %30, %31 : vector<2x32xf32>
    %33 = vector.broadcast %21 : vector<1x32xf32> to vector<2x32xf32>
    %34 = arith.addf %32, %33 : vector<2x32xf32>
    %c0_22 = arith.constant 0 : index
    %c0_23 = arith.constant 0 : index
    %35 = vector.load %arg9[%c0_22, %c0_23] : memref<32x1xbf16, #tpu.memory_space<vmem>>, vector<32x1xbf16>
    %c0_24 = arith.constant 0 : index
    %c0_25 = arith.constant 0 : index
    %36 = vector.load %arg10[%c0_24, %c0_25] : memref<1x1xf32, #tpu.memory_space<vmem>>, vector<1x1xf32>
    %37 = arith.truncf %34 : vector<2x32xf32> to vector<2x32xbf16>
    %cst_26 = arith.constant dense<0.000000e+00> : vector<2x1xf32>
    %38 = tpu.matmul %37, %35, %cst_26 {dimension_numbers = #tpu.dot_dimension_numbers<[1], [0], [0], [1], [0, 0, 1, 1], [], []>} : vector<2x32xbf16>, vector<32x1xbf16>, vector<2x1xf32> -> vector<2x1xf32>
    %39 = vector.broadcast %36 : vector<1x1xf32> to vector<2x1xf32>
    %40 = arith.addf %38, %39 : vector<2x1xf32>
    %c0_27 = arith.constant 0 : index
    %c0_28 = arith.constant 0 : index
    %41 = vector.load %arg11[%c0_27, %c0_28] : memref<2x1xf32, #tpu.memory_space<vmem>>, vector<2x1xf32>
    tpu.vector_store %arg11[%c0_27, %c0_28], %40 {strides = array<i32>} : memref<2x1xf32, #tpu.memory_space<vmem>>, vector<2x1xf32>,
    return
  }
}

</mosaic_0001>

<bundles_post_ra>
// kernel: forward.4
= control target key start
LH: loop header
LB: loop body
LE: loop exit
PB: predicated region body
PF: predicated region fallthrough
CT: control target
= control target key end

     0   :  { %vm149_vm0 = vcmask 1043456   ;;  %v1388_v0 = vmov 0.0   ;;  %vm245_vm1 = vcmask 1042432   ;;  %vm1389_vm2 = vmmov 0   ;;  %s1742_s5 = inlined_call_operand.vmem [shape: bf16[8,32], index: 5, kind: input, shape index: {}]   ;;  %s1743_s7 = inlined_call_operand.vmem [shape: bf16[8,32], index: 7, kind: input, shape index: {}]   ;;  %s1744_s0 = inlined_call_operand.vmem [shape: f32[8,8], index: 0, kind: input, shape index: {}]   ;;  %s1745_s8 = inlined_call_operand.vmem [shape: bf16[6,32], index: 8, kind: input, shape index: {}]   ;;  %s1746_s1 = inlined_call_operand.vmem [shape: f32[16,6], index: 1, kind: input, shape index: {}]   ;;  %s1747_s10 = inlined_call_operand.vmem [shape: bf16[32,1], index: 10, kind: input, shape index: {}]   ;;  %s1748_s4 = inlined_call_operand.vmem [shape: bf16[16,8], index: 4, kind: input, shape index: {}]   ;;  %s1749_s6 = inlined_call_operand.vmem [shape: f32[1,32], index: 6, kind: input, shape index: {}]   ;;  %s1750_s11 = inlined_call_operand.vmem [shape: bf16[32,1], index: 11, kind: input, shape index: {}]   ;;  %s1751_s3 = inlined_call_operand.vmem [shape: bf16[16,8], index: 3, kind: input, shape index: {}]   ;;  %s1752_s13 = inlined_call_operand.vmem [shape: bf16[32,32], index: 13, kind: input, shape index: {}]   ;;  %s1753_s9 = inlined_call_operand.vmem [shape: f32[1,32], index: 9, kind: input, shape index: {}]   ;;  %s1754_s12 = inlined_call_operand.<no memory space> [shape: f32[1,1], index: 12, kind: input, shape index: {}]   ;;  %s1755_s2 = inlined_call_operand.vmem [shape: bf16[8,16], index: 2, kind: input, shape index: {}]   ;;  %s1756_s18 = inlined_call_operand.vmem [shape: bf16[32,32], index: 18, kind: input, shape index: {}]   ;;  %s1757_s19 = inlined_call_operand.vmem [shape: bf16[32,32], index: 19, kind: input, shape index: {}]   ;;  %s1758_s14 = inlined_call_operand.vmem [shape: f32[1,32], index: 14, kind: input, shape index: {}]   ;;  %s1759_s15 = inlined_call_operand.vmem [shape: bf16[32,32], index: 15, kind: input, shape index: {}]   ;;  %s1760_s17 = inlined_call_operand.vmem [shape: bf16[32,32], index: 17, kind: input, shape index: {}]   ;;  %s1761_s16 = inlined_call_operand.vmem [shape: bf16[32,32], index: 16, kind: input, shape index: {}]   ;;  %s1762_s20 = inlined_call_operand.vmem [shape: bf16[32,32], index: 20, kind: input, shape index: {}]   ;;  %s1763_s21 = inlined_call_operand.vmem [shape: f32[1,32], index: 21, kind: input, shape index: {}]   ;;  %s1764_s22 = inlined_call_operand.vmem [shape: f32[1,32], index: 22, kind: input, shape index: {}]   ;;  %s1765_s24 = inlined_call_operand.vmem [shape: f32[1,32], index: 24, kind: input, shape index: {}]   ;;  %s1766_s23 = inlined_call_operand.vmem [shape: f32[1,32], index: 23, kind: input, shape index: {}]   ;;  %s1767_s25 = inlined_call_operand.vmem [shape: f32[8,32], index: 25, kind: output, shape index: {}]  }
   0x1   :  { %1771 = sst [smem:[#allocation3_spill]] %s1742_s5  ;;  %1224 = vmatprep.subr.bf16.mxu0 %v1388_v0  ;;  %1230 = vmatprep.subr.bf16.mxu1 %v1388_v0  ;;  %vm145_vm3 = vcmask 64512   ;;  %vm241_vm4 = vcmask 48128   ;;  %vm369_vm6 = vcmask 261120   ;;  %v1139_v36 = vld [vmem:[%s1753_s9] ss:$0 sm:$0xff]  ;;  %v30_v59 = vstv %s1754_s12 }
   0x2   :  { %1772 = sst [smem:[#allocation4_spill]] %s1743_s7  ;;  %1226 = vmatprep.mubr.msk.bf16.mxu0 %vm1389_vm2, %v1388_v0  ;;  %1232 = vmatprep.mubr.msk.bf16.mxu1 %vm1389_vm2, %v1388_v0  ;;  %v1354_v56 = vld [vmem:[%s1752_s13 + $0x8] sm:$0xff]   ;;  %v1355_v58 = vld [vmem:[%s1752_s13] sm:$0xff]   ;;  %31 = vst [vmem:[#allocation2] sm:$0x1] %v30_v59  ;;  %vm596_vm10 = vcmask 7168  }
   0x3   :  { %1773 = sst [smem:[#allocation5_spill]] %s1744_s0  ;;  %vm613_vm12 = vcmask 130048  }
   0x4   :  { %1774 = sst [smem:[#allocation6_spill]] %s1745_s8 }
   0x5   :  { %1775 = sst [smem:[#allocation7_spill]] %s1746_s1 }
   0x6   :  { %1776 = sst [smem:[#allocation8_spill]] %s1747_s10 }
   0x7   :  { %1777 = sst [smem:[#allocation9_spill]] %s1748_s4 }
   0x8   :  { %1778 = sst [smem:[#allocation10_spill]] %s1749_s6 }
   0x9   :  { %1779 = sst [smem:[#allocation11_spill]] %s1750_s11  ;;  %v1148_v63 = vld [vmem:[#allocation2] ss:$0 sm:$0xff] }
   0xa   :  { %1780 = sst [smem:[#allocation12_spill]] %s1751_s3 }
   0xb   :  { %s1781_s5 = sld [smem:[#allocation3_spill]] }
   0xc   :  { %s1782_s8 = sld [smem:[#allocation4_spill]] }
   0xd   :  { %s1783_s11 = sld [smem:[#allocation5_spill]] }
   0xe   :  { %s1784_s7 = sld [smem:[#allocation6_spill]] }
   0xf   :  { %s1785_s0 = sld [smem:[#allocation7_spill]] }
  0x10   :  { %s1786_s6 = sld [smem:[#allocation8_spill]] }
  0x11   :  { %v83_v1 = vld [vmem:[%s1781_s5] sm:$0xf]  ;;  %s1787_s27 = sld [smem:[#allocation10_spill]] }
  0x12   :  { %v85_v2 = vld [vmem:[%s1782_s8] sm:$0xf]  ;;  %v151_v4 = vsel %vm149_vm0, %v83_v1, 0  ;;  %s1788_s28 = sld [smem:[#allocation9_spill]] }
  0x13   :  { %v130_v3 = vld [vmem:[%s1783_s11] sm:$0xff]  ;;  %v197_v5 = vsel %vm149_vm0, %v85_v2, 0  ;;  %1225 = vmatpush3.bf16.msra.mxu0 %v151_v4  ;;  %s1789_s4 = sld [smem:[#allocation11_spill]] }
  0x14   :  { %v138_v6 = vpack.c.bf16 %v130_v3, %v130_v3  ;;  %v86_v7 = vld [vmem:[%s1784_s7] sm:$0x7]  ;;  %1231 = vmatpush3.bf16.msra.mxu1 %v197_v5  ;;  %1236 = vmatprep.subr.bf16.mxu0 %v1388_v0  ;;  %s1790_s1 = sld [smem:[#allocation12_spill]] }
  0x15   :  { %v247_v8 = vsel %vm245_vm1, %v86_v7, 0  ;;  %1242 = vmatprep.subr.bf16.mxu1 %v1388_v0  ;;  %v131_v9 = vld [vmem:[%s1785_s0] sm:$0xff]  ;;  %v132_v10 = vld [vmem:[%s1785_s0 + $0x8] sm:$0xff] }
  0x16   :  { %1227 = vmatmul.mubr.msk.bf16.vlgmr.msra.gmra.mxu0 %vm145_vm3, %v138_v6  ;;  %v240_v11 = vpack.c.bf16 %v132_v10, %v131_v9  ;;  %v1348_v12 = vld [vmem:[%s1786_s6 + $0x8] sm:$0xff]   ;;  %v1349_v13 = vld [vmem:[%s1786_s6] sm:$0xff]  }
  0x17   :  { %1233 = vmatmul.mubr.msk.bf16.vlgmr.msra.gmra.mxu1 %vm145_vm3, %v138_v6  ;;  %1237 = vmatpush3.bf16.msra.mxu0 %v247_v8  ;;  %v1133_v14 = vld [vmem:[%s1787_s27] ss:$0 sm:$0xff] }
  0x18   :  { %1238 = vmatprep.mubr.msk.bf16.mxu0 %vm1389_vm2, %v1388_v0  ;;  %1248 = vmatprep.subr.bf16.mxu0 %v1388_v0  ;;  %v1350_v23 = vld [vmem:[%s1788_s28] sm:$0xff]  }
  0x19   :  { %1244 = vmatprep.mubr.msk.bf16.mxu1 %vm1389_vm2, %v1388_v0  ;;  %v1351_v34 = vld [vmem:[%s1789_s4 + $0x8] sm:$0xff]   ;;  %v1353_v35 = vld [vmem:[%s1789_s4] sm:$0xff]  }
  0x1a   :  { %v1602_v46 = vld [vmem:[%s1790_s1] sm:$0xff]  }
  0x1e   :  { %1239 = vmatmul.mubr.msk.bf16.vlgmr.msra.gmra.mxu0 %vm241_vm4, %v240_v11 }
  0x1f   :  { %1249 = vmatpush3.bf16.msra.mxu0 %v1348_v12  ;;  %1252 = vmatprep.mubr.msk.bf16.mxu0 %vm1389_vm2, %v1388_v0 }
  0x20   :  { %1250 = vmatprep.subr.bf16.mxu0 %v1388_v0 }
  0x23   :  { %1251 = vmatpush3.bf16.msra.mxu0 %v1349_v13 }
  0x24   :  { %1264 = vmatprep.subr.bf16.mxu0 %v1388_v0 }
  0xd6   :  { %v187_v15 = vpop.f32.mrf.mxu0 }
  0xd7   :  { %v233_v16 = vpop.f32.mrf.mxu1  ;;  %v188_v17 = vadd.f32 %v1133_v14, %v187_v15 }
  0xd8   :  { %v239_v18 = vpack.c.bf16 %v233_v16, %v233_v16  ;;  %v1228_v19 = vpop.f32.mrf.mxu0 }
  0xd9   :  { %v1234_v20 = vpop.f32.mrf.mxu1  ;;  %vm193_vm5 = vcmp.ge.f32.partialorder %v188_v17, 0.0  ;;  %v194_v21 = vmul.f32 0.01, %v188_v17 }
  0xda   :  { %v299_v22 = vsel %vm149_vm0, %v239_v18, 0  ;;  %v190_v24 = vpop.f32.mrf.mxu0 }
  0xdb   :  { %v236_v25 = vpop.f32.mrf.mxu1  ;;  %1243 = vmatpush3.bf16.msra.mxu1 %v299_v22  ;;  %v1573_v26 = vsel %vm193_vm5, %v188_v17, %v194_v21 }
  0xdc   :  { %1256 = vmatprep.subr.bf16.mxu1 %v1388_v0  ;;  %v1578_v27 = vpack.c.bf16 %v1573_v26, %v1573_v26  ;;  %v1229_v28 = vpop.f32.mrf.mxu0 }
  0xdd   :  { %v1235_v29 = vpop.f32.mrf.mxu1 }
  0xde   :  { %1245 = vmatmul.mubr.msk.bf16.vlgmr.msra.gmra.mxu1 %vm145_vm3, %v1350_v23  ;;  %1253 = vmatmul.mubr.msk.bf16.vlgmr.msra.gmra.mxu0 %vm369_vm6, %v1578_v27  ;;  %v283_v30 = vpop.f32.mrf.mxu0 }
  0xdf   :  { %1260 = vmatprep.mubr.msk.bf16.mxu1 %vm1389_vm2, %v1388_v0  ;;  %1266 = vmatprep.mubr.msk.bf16.mxu0 %vm1389_vm2, %v1388_v0 }
  0xe0   :  { %v1240_v31 = vpop.f32.mrf.mxu0  ;;  %1257 = vmatpush3.bf16.msra.mxu1 %v1351_v34 }
  0xe1   :  { %1258 = vmatprep.subr.bf16.mxu1 %v1388_v0 }
  0xe2   :  { %v286_v32 = vpop.f32.mrf.mxu0 }
  0xe4   :  { %v1241_v33 = vpop.f32.mrf.mxu0  ;;  %1259 = vmatpush3.bf16.msra.mxu1 %v1353_v35 }
  0xe5   :  { %1270 = vmatprep.subr.bf16.mxu1 %v1388_v0 }
 0x19e   :  { %v335_v37 = vpop.f32.mrf.mxu1  ;;  %v407_v39 = vpop.f32.mrf.mxu0 }
 0x19f   :  { %v336_v38 = vadd.f32 %v335_v37, %v283_v30  ;;  %v413_v40 = vpack.c.bf16 %v407_v39, %v407_v39 }
 0x1a0   :  { %v1246_v41 = vpop.f32.mrf.mxu1  ;;  %v1254_v43 = vpop.f32.mrf.mxu0 }
 0x1a1   :  { %v348_v42 = vadd.f32 %v1139_v36, %v336_v38  ;;  %v480_v44 = vsel %vm149_vm0, %v413_v40, 0 }
 0x1a2   :  { %v338_v45 = vpop.f32.mrf.mxu1  ;;  %v410_v48 = vpop.f32.mrf.mxu0  ;;  %1265 = vmatpush3.bf16.msra.mxu0 %v480_v44  ;;  %v1357_v44 = vld [vmem:[%s1756_s18] sm:$0xff]  }
 0x1a3   :  { %v339_v47 = vadd.f32 %v338_v45, %v286_v32  ;;  %1278 = vmatprep.subr.bf16.mxu0 %v1388_v0  ;;  %v352_v50 = vmul.f32 0.01, %v348_v42  ;;  %vm350_vm7 = vcmp.ge.f32.partialorder %v348_v42, 0.0  ;;  %v1358_v45 = vld [vmem:[%s1757_s19 + $0x8] sm:$0xff]  }
 0x1a4   :  { %v1247_v49 = vpop.f32.mrf.mxu1  ;;  %v1255_v52 = vpop.f32.mrf.mxu0 }
 0x1a5   :  { %v349_v51 = vadd.f32 %v1139_v36, %v339_v47  ;;  %1267 = vmatmul.mubr.msk.bf16.vlgmr.msra.gmra.mxu0 %vm145_vm3, %v1602_v46  ;;  %v354_v54 = vsel %vm350_vm7, %v348_v42, %v352_v50  ;;  %v1633_v36 = vld [vmem:[%s1755_s2] sm:$0xf]  ;;  %v1356_v42 = vld [vmem:[%s1756_s18 + $0x8] sm:$0xff]   ;;  %v1390_v47 = vmov 0  }
 0x1a6   :  { %1280 = vmatprep.mubr.msk.bf16.mxu0 %vm1389_vm2, %v1388_v0  ;;  %1347 = vset.pattern.permute.xlu0 %v1390_v47 }
 0x1a7   :  { %vm351_vm8 = vcmp.ge.f32.partialorder %v349_v51, 0.0  ;;  %v353_v53 = vmul.f32 0.01, %v349_v51 }
 0x1a9   :  { %v355_v55 = vsel %vm351_vm8, %v349_v51, %v353_v53 }
 0x1aa   :  { %v414_v57 = vpack.c.bf16 %v355_v55, %v354_v54 }
 0x1ac   :  { %1261 = vmatmul.mubr.msk.bf16.vlgmr.msra.gmra.mxu1 %vm369_vm6, %v414_v57 }
 0x1ad   :  { %1271 = vmatpush3.bf16.msra.mxu1 %v1354_v56  ;;  %1274 = vmatprep.mubr.msk.bf16.mxu1 %vm1389_vm2, %v1388_v0 }
 0x1ae   :  { %1272 = vmatprep.subr.bf16.mxu1 %v1388_v0 }
 0x1b1   :  { %1273 = vmatpush3.bf16.msra.mxu1 %v1355_v58 }
 0x1b2   :  { %1284 = vmatprep.subr.bf16.mxu1 %v1388_v0 }
 0x1b4   :  { %1275 = vmatmul.mubr.msk.bf16.vlgmr.msra.gmra.mxu1 %vm369_vm6, %v414_v57 }
 0x1b5   :  { %1286 = vmatprep.mubr.msk.bf16.mxu1 %vm1389_vm2, %v1388_v0 }
 0x265   :  { %v516_v60 = vpop.f32.mrf.mxu0 }
 0x267   :  { %v1268_v61 = vpop.f32.mrf.mxu0 }
 0x269   :  { %v519_v62 = vpop.f32.mrf.mxu0 }
 0x26b   :  { %v1269_v2 = vpop.f32.mrf.mxu0 }
 0x26c   :  { %v464_v1 = vpop.f32.mrf.mxu1 }
 0x26d   :  { %v517_v3 = vadd.f32 %v516_v60, %v464_v1 }
 0x26e   :  { %v1262_v4 = vpop.f32.mrf.mxu1 }
 0x26f   :  { %v529_v5 = vadd.f32 %v1148_v63, %v517_v3  ;;  %v1149_v3 = vld [vmem:[%s1758_s14] ss:$0 sm:$0xff] }
 0x270   :  { %v467_v6 = vpop.f32.mrf.mxu1 }
 0x271   :  { %v533_v7 = vmul.f32 0.01, %v529_v5  ;;  %v520_v8 = vadd.f32 %v519_v62, %v467_v6  ;;  %vm531_vm9 = vcmp.ge.f32.partialorder %v529_v5, 0.0 }
 0x272   :  { %v1263_v9 = vpop.f32.mrf.mxu1 }
 0x273   :  { %v530_v10 = vadd.f32 %v1148_v63, %v520_v8  ;;  %v535_v12 = vsel %vm531_vm9, %v529_v5, %v533_v7 }
 0x274   :  { %v1626_v11 = vpop.f32.mrf.mxu1  ;;  %v597_v16 = vsel %vm596_vm10, %v535_v12, -inf }
 0x275   :  { %vm532_vm11 = vcmp.ge.f32.partialorder %v530_v10, 0.0  ;;  %v534_v13 = vmul.f32 0.01, %v530_v10  ;;  %v590_v5 = vadd.f32 %v1149_v3, %v1626_v11  ;;  %v1361_v11 = vld [vmem:[%s1760_s17 + $0x8] sm:$0xff]  }
 0x276   :  { %v1276_v14 = vpop.f32.mrf.mxu1 }
 0x277   :  { %v536_v15 = vsel %vm532_vm11, %v530_v10, %v534_v13  ;;  %v1362_v13 = vld [vmem:[%s1759_s15] sm:$0xff]  }
 0x278   :  { %v598_v17 = vsel %vm596_vm10, %v536_v15, -inf  ;;  %v1628_v18 = vpop.f32.mrf.mxu1  ;;  %v1363_v14 = vld [vmem:[%s1760_s17] sm:$0xff]  }
 0x279   :  { %v599_v19 = vmax.f32 %v597_v16, %v598_v17  ;;  %v593_v6 = vadd.f32 %v1149_v3, %v1628_v18 }
 0x27a   :  { %v1277_v20 = vpop.f32.mrf.mxu1 }
 0x27b   :  { %v600_v21 = vrot.slane %v599_v19, 4 }
 0x27d   :  { %v601_v22 = vmax.f32 %v599_v19, %v600_v21 }
 0x27f   :  { %v602_v23 = vrot.slane %v601_v22, 2 }
 0x281   :  { %v603_v24 = vmax.f32 %v601_v22, %v602_v23  ;;  %v1364_v23 = vld [vmem:[%s1761_s16 + $0x8] sm:$0xff]  }
 0x283   :  { %v604_v25 = vrot.slane %v603_v24, 1 }
 0x285   :  { %v605_v28 = vmax.f32 %v603_v24, %v604_v25  ;;  %v1365_v25 = vld [vmem:[%s1761_s16] sm:$0xff]  }
 0x287   :  { %v606_v29 = vsub.f32 %v535_v12, %v605_v28  ;;  %v607_v30 = vsub.f32 %v536_v15, %v605_v28  ;;  %v1360_v12 = vld [vmem:[%s1759_s15 + $0x8] sm:$0xff]  }
 0x288   :  { %v1366_v28 = vld [vmem:[%s1762_s20 + $0x8] sm:$0xff]  }
 0x289   :  { %v608_v31 = vmul.f32 1.442695, %v606_v29  ;;  %v610_v32 = vmul.f32 1.442695, %v607_v30  ;;  %v1367_v29 = vld [vmem:[%s1762_s20] sm:$0xff]  }
 0x28a   :  { %v1163_v30 = vld [vmem:[%s1763_s21] ss:$0 sm:$0xff] }
 0x28b   :  { %1368 = vpow2.f32 %v608_v31 }
 0x28c   :  { %1370 = vpow2.f32 %v610_v32 }
 0x298   :  { %v1369_v33 = vpop.eup %1368 }
 0x299   :  { %v1371_v34 = vpop.eup %1370 }
 0x29a   :  { %v612_v35 = vpack.c.bf16 %v1371_v34, %v1369_v33 }
 0x29c   :  { %1279 = vmatpush3.bf16.msra.mxu0 %v612_v35 }
 0x29d   :  { %1290 = vmatprep.subr.bf16.mxu0 %v1388_v0 }
 0x29f   :  { %1281 = vmatmul.mubr.msk.bf16.vlgmr.msra.gmra.mxu0 %vm613_vm12, %v1633_v36 }
 0x2a0   :  { %1292 = vmatprep.mubr.msk.bf16.mxu0 %vm1389_vm2, %v1388_v0 }
 0x35f   :  { %v651_v37 = vpop.f32.mrf.mxu0 }
 0x360   :  { %v657_v38 = vpack.c.bf16 %v651_v37, %v651_v37 }
 0x361   :  { %v1282_v39 = vpop.f32.mrf.mxu0 }
 0x362   :  { %v659_v40 = vsel %vm149_vm0, %v657_v38, 0 }
 0x363   :  { %v654_v41 = vpop.f32.mrf.mxu0  ;;  %1285 = vmatpush3.bf16.msra.mxu1 %v659_v40 }
 0x364   :  { %1296 = vmatprep.subr.bf16.mxu1 %v1388_v0 }
 0x365   :  { %v1283_v43 = vpop.f32.mrf.mxu0 }
 0x366   :  { %1287 = vmatmul.mubr.msk.bf16.vlgmr.msra.gmra.mxu1 %vm145_vm3, %v1602_v46  ;;  %v1359_v46 = vld [vmem:[%s1757_s19] sm:$0xff]  }
 0x367   :  { %1297 = vmatpush3.bf16.msra.mxu1 %v1356_v42  ;;  %1300 = vmatprep.mubr.msk.bf16.mxu1 %vm1389_vm2, %v1388_v0 }
 0x368   :  { %1298 = vmatprep.subr.bf16.mxu1 %v1388_v0 }
 0x36b   :  { %1299 = vmatpush3.bf16.msra.mxu1 %v1357_v44 }
 0x36c   :  { %1312 = vmatprep.subr.bf16.mxu1 %v1388_v0 }
 0x36e   :  { %1301 = vmatmul.mubr.msk.bf16.vlgmr.msra.gmra.mxu1 %vm369_vm6, %v1578_v27 }
 0x36f   :  { %1313 = vmatpush3.bf16.msra.mxu1 %v1358_v45  ;;  %1316 = vmatprep.mubr.msk.bf16.mxu1 %vm1389_vm2, %v1388_v0 }
 0x370   :  { %1314 = vmatprep.subr.bf16.mxu1 %v1388_v0 }
 0x373   :  { %1315 = vmatpush3.bf16.msra.mxu1 %v1359_v46 }
 0x374   :  { %1328 = vmatprep.subr.bf16.mxu1 %v1388_v0 }
 0x376   :  { %1317 = vmatmul.mubr.msk.bf16.vlgmr.msra.gmra.mxu1 %vm369_vm6, %v1578_v27 }
 0x377   :  { %1332 = vmatprep.mubr.msk.bf16.mxu1 %vm1389_vm2, %v1388_v0  ;;  %1329 = vmatpush3.bf16.msra.mxu1 %v1361_v11 }
 0x378   :  { %1330 = vmatprep.subr.bf16.mxu1 %v1388_v0 }
 0x37b   :  { %1331 = vmatpush3.bf16.msra.mxu1 %v1363_v14 }
 0x426   :  { %v695_v48 = vpop.f32.mrf.mxu1 }
 0x427   :  { %v702_v49 = vmax.f32 %v695_v48, 1e-30 }
 0x428   :  { %v1288_v50 = vpop.f32.mrf.mxu1 }
 0x429   :  { %1372 = vrcp.f32 %v702_v49 }
 0x42a   :  { %v698_v51 = vpop.f32.mrf.mxu1 }
 0x42b   :  { %v703_v52 = vmax.f32 %v698_v51, 1e-30 }
 0x42c   :  { %v1289_v53 = vpop.f32.mrf.mxu1 }
 0x42d   :  { %1374 = vrcp.f32 %v703_v52 }
 0x42e   :  { %v1670_v54 = vpop.f32.mrf.mxu1 }
 0x430   :  { %v1302_v55 = vpop.f32.mrf.mxu1 }
 0x431   :  { %v1177_v55 = vld [vmem:[%s1765_s24] ss:$0 sm:$0xff] }
 0x432   :  { %v816_v56 = vpop.f32.mrf.mxu1 }
 0x434   :  { %v1303_v57 = vpop.f32.mrf.mxu1 }
 0x435   :  { %v1173_v57 = vld [vmem:[%s1766_s23] ss:$0 sm:$0xff] }
 0x436   :  { %v1373_v58 = vpop.eup %1372  ;;  %v1672_v59 = vpop.f32.mrf.mxu1 }
 0x437   :  { %v706_v60 = vmul.f32 %v1373_v58, %v1369_v33 }
 0x438   :  { %v1318_v61 = vpop.f32.mrf.mxu1 }
 0x439   :  { %710 = vperm.xlu0 %1347, %v706_v60  }
 0x43a   :  { %v1375_v62 = vpop.eup %1374  ;;  %v936_v63 = vpop.f32.mrf.mxu1 }
 0x43b   :  { %v707_v1 = vmul.f32 %v1375_v62, %v1371_v34 }
 0x43c   :  { %v1319_v2 = vpop.f32.mrf.mxu1 }
 0x43d   :  { %715 = vperm.xlu0 %1347, %v707_v1  }
 0x4b4   :  { %v711_v4 = vpop.permute.xlu0 %710 }
 0x4b5   :  { %v718_v8 = vmul.f32 %v711_v4, %v590_v5 }
 0x4b8   :  { %v716_v7 = vpop.permute.xlu0 %715 }
 0x4b9   :  { %v719_v9 = vmul.f32 %v716_v7, %v593_v6 }
 0x4bb   :  { %v720_v10 = vpack.c.bf16 %v719_v9, %v718_v8 }
 0x4bd   :  { %1291 = vmatpush3.bf16.msra.mxu0 %v720_v10 }
 0x4be   :  { %1304 = vmatprep.subr.bf16.mxu0 %v1388_v0 }
 0x4c0   :  { %1293 = vmatmul.mubr.msk.bf16.vlgmr.msra.gmra.mxu0 %vm613_vm12, %v1633_v36 }
 0x4c1   :  { %1308 = vmatprep.mubr.msk.bf16.mxu0 %vm1389_vm2, %v1388_v0  ;;  %1305 = vmatpush3.bf16.msra.mxu0 %v1360_v12 }
 0x4c2   :  { %1306 = vmatprep.subr.bf16.mxu0 %v1388_v0 }
 0x4c5   :  { %1307 = vmatpush3.bf16.msra.mxu0 %v1362_v13 }
 0x4c6   :  { %1320 = vmatprep.subr.bf16.mxu0 %v1388_v0 }
 0x580   :  { %v755_v15 = vpop.f32.mrf.mxu0 }
 0x581   :  { %v762_v16 = vmul.f32 1.442695, %v755_v15  ;;  %vm761_vm13 = vcmp.gt.f32.partialorder %v755_v15, 0.0 }
 0x582   :  { %v1294_v17 = vpop.f32.mrf.mxu0 }
 0x583   :  { %1376 = vpow2.f32 %v762_v16 }
 0x584   :  { %v758_v18 = vpop.f32.mrf.mxu0 }
 0x586   :  { %v1295_v19 = vpop.f32.mrf.mxu0 }
 0x590   :  { %v1377_v20 = vpop.eup %1376 }
 0x591   :  { %v1156_v21 = vadd.f32 -1.0, %v1377_v20 }
 0x593   :  { %v765_v22 = vsel %vm761_vm13, %v755_v15, %v1156_v21 }
 0x594   :  { %v766_v24 = vpack.c.bf16 %v765_v22, %v765_v22 }
 0x596   :  { %1309 = vmatmul.mubr.msk.bf16.vlgmr.msra.gmra.mxu0 %vm369_vm6, %v766_v24  ;;  %1333 = vmatmul.mubr.msk.bf16.vlgmr.msra.gmra.mxu1 %vm369_vm6, %v766_v24 }
 0x597   :  { %1321 = vmatpush3.bf16.msra.mxu0 %v1364_v23  ;;  %1324 = vmatprep.mubr.msk.bf16.mxu0 %vm1389_vm2, %v1388_v0 }
 0x598   :  { %1322 = vmatprep.subr.bf16.mxu0 %v1388_v0 }
 0x59b   :  { %1323 = vmatpush3.bf16.msra.mxu0 %v1365_v25 }
 0x59c   :  { %1336 = vmatprep.subr.bf16.mxu0 %v1388_v0 }
 0x59e   :  { %1325 = vmatmul.mubr.msk.bf16.vlgmr.msra.gmra.mxu0 %vm369_vm6, %v766_v24 }
 0x59f   :  { %1337 = vmatpush3.bf16.msra.mxu0 %v1366_v28  ;;  %1340 = vmatprep.mubr.msk.bf16.mxu0 %vm1389_vm2, %v1388_v0 }
 0x5a0   :  { %1338 = vmatprep.subr.bf16.mxu0 %v1388_v0 }
 0x5a3   :  { %1339 = vmatpush3.bf16.msra.mxu0 %v1367_v29 }
 0x5a6   :  { %1341 = vmatmul.mubr.msk.bf16.vlgmr.msra.gmra.mxu0 %vm369_vm6, %v1578_v27  ;;  %v1171_v27 = vld [vmem:[%s1764_s22] ss:$0 sm:$0xff] }
 0x656   :  { %v868_v31 = vpop.f32.mrf.mxu0  ;;  %v1056_v32 = vpop.f32.mrf.mxu1 }
 0x657   :  { %v869_v33 = vadd.f32 %v868_v31, %v1670_v54  ;;  %v1057_v60 = vadd.f32 %v1173_v57, %v1056_v32 }
 0x658   :  { %v1310_v34 = vpop.f32.mrf.mxu0  ;;  %v1334_v35 = vpop.f32.mrf.mxu1 }
 0x659   :  { %v880_v36 = vadd.f32 %v1163_v30, %v869_v33 }
 0x65a   :  { %v871_v37 = vpop.f32.mrf.mxu0  ;;  %v1059_v38 = vpop.f32.mrf.mxu1 }
 0x65b   :  { %v1164_v39 = vmul.f32 -1.442695, %v880_v36 }
 0x65c   :  { %v1311_v40 = vpop.f32.mrf.mxu0  ;;  %v1335_v0 = vpop.f32.mrf.mxu1 }
 0x65d   :  { %1378 = vpow2.f32 %v1164_v39 }
 0x65e   :  { %v985_v41 = vpop.f32.mrf.mxu0 }
 0x65f   :  { %v986_v42 = vadd.f32 %v985_v41, %v1672_v59 }
 0x660   :  { %v1326_v43 = vpop.f32.mrf.mxu0 }
 0x661   :  { %v997_v44 = vadd.f32 %v1171_v27, %v986_v42 }
 0x662   :  { %v988_v45 = vpop.f32.mrf.mxu0 }
 0x663   :  { %v1172_v46 = vmul.f32 -1.442695, %v997_v44 }
 0x664   :  { %v1327_v47 = vpop.f32.mrf.mxu0 }
 0x665   :  { %1380 = vpow2.f32 %v1172_v46 }
 0x666   :  { %v1114_v48 = vpop.f32.mrf.mxu0 }
 0x667   :  { %v1115_v58 = vadd.f32 %v1177_v55, %v1114_v48 }
 0x668   :  { %v1342_v49 = vpop.f32.mrf.mxu0 }
 0x66a   :  { %v1379_v50 = vpop.eup %1378  ;;  %v1117_v51 = vpop.f32.mrf.mxu0 }
 0x66b   :  { %v884_v52 = vadd.f32 1.0, %v1379_v50 }
 0x66c   :  { %v1343_v53 = vpop.f32.mrf.mxu0 }
 0x66d   :  { %1382 = vrcp.f32 %v884_v52 }
 0x672   :  { %v1381_v54 = vpop.eup %1380 }
 0x673   :  { %v1001_v56 = vadd.f32 1.0, %v1381_v54 }
 0x675   :  { %1384 = vrcp.f32 %v1001_v56 }
 0x67a   :  { %v1383_v59 = vpop.eup %1382 }
 0x67b   :  { %v1120_v61 = vmul.f32 %v1383_v59, %v1115_v58 }
 0x67d   :  { %v1121_v62 = vadd.f32 %v1120_v61, %v1057_v60 }
 0x67f   :  { %1386 = vtanh.f32 %v1121_v62 }
 0x682   :  { %v1385_v63 = vpop.eup %1384 }
 0x683   :  { %v1123_v1 = vsub.f32 1.0, %v1385_v63  ;;  %v1125_v3 = vmul.f32 %v1385_v63, %v1573_v26 }
 0x68c   :  { %v1387_v2 = vpop.eup %1386 }
 0x68d   :  { %v1124_v4 = vmul.f32 %v1387_v2, %v1123_v1 }
 0x68f   :  { %v1126_v5 = vadd.f32 %v1125_v3, %v1124_v4 }
 0x691   :  { %v1127_v6 = vmax.f32 %v1126_v5, 0.0 }
 0x693   :  { %1128 = vst.msk [vmem:[%s1767_s25] sm:$0xff] %vm369_vm6, %v1127_v6 }

// kernel: forward.5
= control target key start
LH: loop header
LB: loop body
LE: loop exit
PB: predicated region body
PF: predicated region fallthrough
CT: control target
= control target key end

     0   :  { %v1243_v0 = vmov 0.0   ;;  %vm1244_vm0 = vmmov 0   ;;  %vm134_vm1 = vcmask 261120   ;;  %vm241_vm2 = vcmask 1043456   ;;  %s1544_s4 = inlined_call_operand.vmem [shape: bf16[32,1], index: 4, kind: input, shape index: {}]   ;;  %s1545_s5 = inlined_call_operand.vmem [shape: bf16[32,1], index: 5, kind: input, shape index: {}]   ;;  %s1546_s0 = inlined_call_operand.vmem [shape: f32[8,32], index: 0, kind: input, shape index: {}]   ;;  %s1547_s3 = inlined_call_operand.vmem [shape: bf16[16,8], index: 3, kind: input, shape index: {}]   ;;  %s1548_s2 = inlined_call_operand.vmem [shape: bf16[16,8], index: 2, kind: input, shape index: {}]   ;;  %s1549_s6 = inlined_call_operand.<no memory space> [shape: f32[1,1], index: 6, kind: input, shape index: {}]   ;;  %s1550_s7 = inlined_call_operand.vmem [shape: bf16[32,32], index: 7, kind: input, shape index: {}]   ;;  %s1551_s1 = inlined_call_operand.vmem [shape: bf16[8,16], index: 1, kind: input, shape index: {}]   ;;  %s1552_s8 = inlined_call_operand.vmem [shape: f32[1,32], index: 8, kind: input, shape index: {}]   ;;  %s1553_s14 = inlined_call_operand.vmem [shape: bf16[32,32], index: 14, kind: input, shape index: {}]   ;;  %s1554_s15 = inlined_call_operand.vmem [shape: bf16[32,32], index: 15, kind: input, shape index: {}]   ;;  %s1555_s11 = inlined_call_operand.vmem [shape: bf16[32,32], index: 11, kind: input, shape index: {}]   ;;  %s1556_s13 = inlined_call_operand.vmem [shape: bf16[32,32], index: 13, kind: input, shape index: {}]   ;;  %s1557_s12 = inlined_call_operand.vmem [shape: bf16[32,32], index: 12, kind: input, shape index: {}]   ;;  %s1558_s16 = inlined_call_operand.vmem [shape: bf16[32,32], index: 16, kind: input, shape index: {}]   ;;  %s1559_s17 = inlined_call_operand.vmem [shape: f32[1,32], index: 17, kind: input, shape index: {}]   ;;  %s1560_s18 = inlined_call_operand.vmem [shape: f32[1,32], index: 18, kind: input, shape index: {}]   ;;  %s1561_s20 = inlined_call_operand.vmem [shape: f32[1,32], index: 20, kind: input, shape index: {}]   ;;  %s1562_s19 = inlined_call_operand.vmem [shape: f32[1,32], index: 19, kind: input, shape index: {}]   ;;  %s1563_s9 = inlined_call_operand.vmem [shape: f32[1,32], index: 9, kind: input, shape index: {}]   ;;  %s1564_s10 = inlined_call_operand.vmem [shape: f32[1,32], index: 10, kind: input, shape index: {}]   ;;  %s1565_s21 = inlined_call_operand.vmem [shape: f32[8,32], index: 21, kind: output, shape index: {}]  }
   0x1   :  { %1568 = sst [smem:[#allocation3_spill]] %s1544_s4  ;;  %1091 = vmatprep.subr.bf16.mxu0 %v1243_v0  ;;  %1099 = vmatprep.subr.bf16.mxu1 %v1243_v0  ;;  %vm237_vm3 = vcmask 64512   ;;  %v1209_v22 = vld [vmem:[%s1550_s7 + $0x8] sm:$0xff]   ;;  %v1210_v23 = vld [vmem:[%s1550_s7] sm:$0xff]   ;;  %vm455_vm5 = vcmask 7168   ;;  %vm472_vm7 = vcmask 130048  }
   0x2   :  { %1569 = sst [smem:[#allocation4_spill]] %s1545_s5  ;;  %1095 = vmatprep.mubr.msk.bf16.mxu0 %vm1244_vm0, %v1243_v0  ;;  %1103 = vmatprep.mubr.msk.bf16.mxu1 %vm1244_vm0, %v1243_v0  ;;  %v116_v57 = vld [vmem:[%s1551_s1] sm:$0xf] }
   0x3   :  { %1570 = sst [smem:[#allocation5_spill]] %s1546_s0  ;;  %v1017_v58 = vld [vmem:[%s1552_s8] ss:$0 sm:$0xff] }
   0x4   :  { %1571 = sst [smem:[#allocation6_spill]] %s1547_s3 }
   0x5   :  { %1572 = sst [smem:[#allocation7_spill]] %s1548_s2 }
   0x6   :  { %1573 = sst [smem:[#allocation8_spill]] %s1549_s6 }
   0x7   :  { %s1574_s26 = sld [smem:[#allocation3_spill]] }
   0x8   :  { %s1575_s28 = sld [smem:[#allocation4_spill]] }
   0x9   :  { %s1576_s23 = sld [smem:[#allocation5_spill]] }
   0xa   :  { %s1577_s0 = sld [smem:[#allocation7_spill]] }
   0xb   :  { %s1578_s27 = sld [smem:[#allocation6_spill]] }
   0xc   :  { %s1579_s2 = sld [smem:[#allocation8_spill]] }
   0xd   :  { %v1203_v1 = vld [vmem:[%s1574_s26 + $0x8] sm:$0xff]   ;;  %v1205_v3 = vld [vmem:[%s1574_s26] sm:$0xff]  }
   0xe   :  { %v1204_v2 = vld [vmem:[%s1575_s28 + $0x8] sm:$0xff]   ;;  %1092 = vmatpush3.bf16.msra.mxu0 %v1203_v1  ;;  %v1206_v4 = vld [vmem:[%s1575_s28] sm:$0xff]  }
   0xf   :  { %1100 = vmatpush3.bf16.msra.mxu1 %v1204_v2  ;;  %1093 = vmatprep.subr.bf16.mxu0 %v1243_v0  ;;  %v1379_v5 = vld [vmem:[%s1576_s23] sm:$0xff] }
  0x10   :  { %1101 = vmatprep.subr.bf16.mxu1 %v1243_v0  ;;  %v1383_v6 = vpack.c.bf16 %v1379_v5, %v1379_v5  ;;  %v1399_v14 = vld [vmem:[%s1577_s0] sm:$0xff]  }
  0x11   :  { %v1405_v17 = vld [vmem:[%s1578_s27] sm:$0xff]  }
  0x12   :  { %1094 = vmatpush3.bf16.msra.mxu0 %v1205_v3  ;;  %v26_v21 = vstv %s1579_s2 }
  0x13   :  { %1102 = vmatpush3.bf16.msra.mxu1 %v1206_v4  ;;  %1107 = vmatprep.subr.bf16.mxu0 %v1243_v0  ;;  %27 = vst [vmem:[#allocation2] sm:$0x1] %v26_v21 }
  0x14   :  { %1113 = vmatprep.subr.bf16.mxu1 %v1243_v0 }
  0x15   :  { %1096 = vmatmul.mubr.msk.bf16.vlgmr.msra.gmra.mxu0 %vm134_vm1, %v1383_v6 }
  0x16   :  { %1104 = vmatmul.mubr.msk.bf16.vlgmr.msra.gmra.mxu1 %vm134_vm1, %v1383_v6  ;;  %1109 = vmatprep.mubr.msk.bf16.mxu0 %vm1244_vm0, %v1243_v0 }
  0x17   :  { %1115 = vmatprep.mubr.msk.bf16.mxu1 %vm1244_vm0, %v1243_v0 }
  0x1a   :  { %v1016_v26 = vld [vmem:[#allocation2] ss:$0 sm:$0xff] }
  0xd5   :  { %v172_v7 = vpop.f32.mrf.mxu0 }
  0xd6   :  { %v178_v8 = vpack.c.bf16 %v172_v7, %v172_v7  ;;  %v225_v9 = vpop.f32.mrf.mxu1 }
  0xd7   :  { %v231_v10 = vpack.c.bf16 %v225_v9, %v225_v9  ;;  %v1097_v11 = vpop.f32.mrf.mxu0 }
  0xd8   :  { %v295_v12 = vsel %vm241_vm2, %v178_v8, 0  ;;  %v1105_v13 = vpop.f32.mrf.mxu1 }
  0xd9   :  { %v243_v15 = vsel %vm241_vm2, %v231_v10, 0  ;;  %v175_v16 = vpop.f32.mrf.mxu0  ;;  %1114 = vmatpush3.bf16.msra.mxu1 %v295_v12 }
  0xda   :  { %v228_v18 = vpop.f32.mrf.mxu1  ;;  %1108 = vmatpush3.bf16.msra.mxu0 %v243_v15  ;;  %1127 = vmatprep.subr.bf16.mxu1 %v1243_v0  ;;  %v1245_v16 = vmov 0  }
  0xdb   :  { %v1098_v19 = vpop.f32.mrf.mxu0  ;;  %1119 = vmatprep.subr.bf16.mxu0 %v1243_v0  ;;  %1202 = vset.pattern.permute.xlu0 %v1245_v16 }
  0xdc   :  { %v1106_v20 = vpop.f32.mrf.mxu1  ;;  %1116 = vmatmul.mubr.msk.bf16.vlgmr.msra.gmra.mxu1 %vm237_vm3, %v1399_v14 }
  0xdd   :  { %1110 = vmatmul.mubr.msk.bf16.vlgmr.msra.gmra.mxu0 %vm237_vm3, %v1405_v17  ;;  %1129 = vmatprep.mubr.msk.bf16.mxu1 %vm1244_vm0, %v1243_v0 }
  0xde   :  { %1123 = vmatprep.mubr.msk.bf16.mxu0 %vm1244_vm0, %v1243_v0  ;;  %1120 = vmatpush3.bf16.msra.mxu0 %v1209_v22 }
  0xdf   :  { %1121 = vmatprep.subr.bf16.mxu0 %v1243_v0 }
  0xe2   :  { %1122 = vmatpush3.bf16.msra.mxu0 %v1210_v23 }
  0xe3   :  { %1133 = vmatprep.subr.bf16.mxu0 %v1243_v0 }
  0xe5   :  { %1124 = vmatmul.mubr.msk.bf16.vlgmr.msra.gmra.mxu0 %vm134_vm1, %v1383_v6 }
  0xe6   :  { %1135 = vmatprep.mubr.msk.bf16.mxu0 %vm1244_vm0, %v1243_v0 }
 0x19c   :  { %v331_v24 = vpop.f32.mrf.mxu1 }
 0x19d   :  { %v279_v25 = vpop.f32.mrf.mxu0 }
 0x19e   :  { %v332_v27 = vadd.f32 %v331_v24, %v279_v25  ;;  %v1117_v28 = vpop.f32.mrf.mxu1 }
 0x19f   :  { %v1111_v29 = vpop.f32.mrf.mxu0 }
 0x1a0   :  { %v344_v30 = vadd.f32 %v1016_v26, %v332_v27  ;;  %v334_v31 = vpop.f32.mrf.mxu1 }
 0x1a1   :  { %v282_v32 = vpop.f32.mrf.mxu0 }
 0x1a2   :  { %v348_v33 = vmul.f32 0.01, %v344_v30  ;;  %v335_v34 = vadd.f32 %v334_v31, %v282_v32  ;;  %v1118_v35 = vpop.f32.mrf.mxu1  ;;  %vm346_vm4 = vcmp.ge.f32.partialorder %v344_v30, 0.0  ;;  %v1212_v32 = vld [vmem:[%s1553_s14] sm:$0xff]  }
 0x1a3   :  { %v1112_v36 = vpop.f32.mrf.mxu0  ;;  %v1215_v35 = vld [vmem:[%s1555_s11 + $0x8] sm:$0xff]  }
 0x1a4   :  { %v345_v37 = vadd.f32 %v1016_v26, %v335_v34  ;;  %v350_v38 = vsel %vm346_vm4, %v344_v30, %v348_v33  ;;  %v1211_v26 = vld [vmem:[%s1553_s14 + $0x8] sm:$0xff]   ;;  %v1214_v34 = vld [vmem:[%s1554_s15] sm:$0xff]  }
 0x1a5   :  { %v456_v41 = vsel %vm455_vm5, %v350_v38, -inf  ;;  %v404_v59 = vpop.f32.mrf.mxu0  ;;  %v1213_v33 = vld [vmem:[%s1554_s15 + $0x8] sm:$0xff]  }
 0x1a6   :  { %vm347_vm6 = vcmp.ge.f32.partialorder %v345_v37, 0.0  ;;  %v349_v39 = vmul.f32 0.01, %v345_v37  ;;  %v405_v60 = vadd.f32 %v1017_v58, %v404_v59  ;;  %v1216_v36 = vld [vmem:[%s1556_s13 + $0x8] sm:$0xff]  }
 0x1a7   :  { %v1125_v61 = vpop.f32.mrf.mxu0 }
 0x1a8   :  { %v351_v40 = vsel %vm347_vm6, %v345_v37, %v349_v39  ;;  %v410_v62 = vpack.c.bf16 %v405_v60, %v405_v60  ;;  %v1217_v37 = vld [vmem:[%s1555_s11] sm:$0xff]  }
 0x1a9   :  { %v457_v42 = vsel %vm455_vm5, %v351_v40, -inf  ;;  %v407_v63 = vpop.f32.mrf.mxu0  ;;  %v1032_v60 = vld [vmem:[%s1559_s17] ss:$0 sm:$0xff] }
 0x1aa   :  { %v458_v43 = vmax.f32 %v456_v41, %v457_v42  ;;  %v412_v1 = vsel %vm241_vm2, %v410_v62, 0 }
 0x1ab   :  { %v1126_v2 = vpop.f32.mrf.mxu0  ;;  %1128 = vmatpush3.bf16.msra.mxu1 %v412_v1 }
 0x1ac   :  { %v459_v44 = vrot.slane %v458_v43, 4  ;;  %1139 = vmatprep.subr.bf16.mxu1 %v1243_v0 }
 0x1ae   :  { %v460_v45 = vmax.f32 %v458_v43, %v459_v44  ;;  %1130 = vmatmul.mubr.msk.bf16.vlgmr.msra.gmra.mxu1 %vm237_vm3, %v1405_v17 }
 0x1af   :  { %1141 = vmatprep.mubr.msk.bf16.mxu1 %vm1244_vm0, %v1243_v0 }
 0x1b0   :  { %v461_v46 = vrot.slane %v460_v45, 2 }
 0x1b2   :  { %v462_v47 = vmax.f32 %v460_v45, %v461_v46 }
 0x1b4   :  { %v463_v48 = vrot.slane %v462_v47, 1 }
 0x1b6   :  { %v464_v49 = vmax.f32 %v462_v47, %v463_v48  ;;  %v1219_v47 = vld [vmem:[%s1557_s12 + $0x8] sm:$0xff]  }
 0x1b8   :  { %v465_v50 = vsub.f32 %v350_v38, %v464_v49  ;;  %v466_v51 = vsub.f32 %v351_v40, %v464_v49  ;;  %v1218_v38 = vld [vmem:[%s1556_s13] sm:$0xff]  }
 0x1b9   :  { %v1220_v49 = vld [vmem:[%s1557_s12] sm:$0xff]  }
 0x1ba   :  { %v467_v52 = vmul.f32 1.442695, %v465_v50  ;;  %v469_v53 = vmul.f32 1.442695, %v466_v51  ;;  %v1221_v50 = vld [vmem:[%s1558_s16 + $0x8] sm:$0xff]   ;;  %v1222_v51 = vld [vmem:[%s1558_s16] sm:$0xff]  }
 0x1bc   :  { %1223 = vpow2.f32 %v467_v52 }
 0x1bd   :  { %1225 = vpow2.f32 %v469_v53 }
 0x1c9   :  { %v1224_v54 = vpop.eup %1223 }
 0x1ca   :  { %v1226_v55 = vpop.eup %1225 }
 0x1cb   :  { %v471_v56 = vpack.c.bf16 %v1226_v55, %v1224_v54 }
 0x1cd   :  { %1134 = vmatpush3.bf16.msra.mxu0 %v471_v56 }
 0x1ce   :  { %1145 = vmatprep.subr.bf16.mxu0 %v1243_v0 }
 0x1d0   :  { %1136 = vmatmul.mubr.msk.bf16.vlgmr.msra.gmra.mxu0 %vm472_vm7, %v116_v57 }
 0x1d1   :  { %1147 = vmatprep.mubr.msk.bf16.mxu0 %vm1244_vm0, %v1243_v0 }
 0x26e   :  { %v448_v11 = vpop.f32.mrf.mxu1 }
 0x270   :  { %v1131_v12 = vpop.f32.mrf.mxu1 }
 0x272   :  { %v451_v13 = vpop.f32.mrf.mxu1 }
 0x274   :  { %v1132_v15 = vpop.f32.mrf.mxu1 }
 0x290   :  { %v510_v3 = vpop.f32.mrf.mxu0 }
 0x291   :  { %v516_v4 = vpack.c.bf16 %v510_v3, %v510_v3 }
 0x292   :  { %v1137_v7 = vpop.f32.mrf.mxu0 }
 0x293   :  { %v518_v8 = vsel %vm241_vm2, %v516_v4, 0 }
 0x294   :  { %v513_v9 = vpop.f32.mrf.mxu0  ;;  %1140 = vmatpush3.bf16.msra.mxu1 %v518_v8 }
 0x295   :  { %1151 = vmatprep.subr.bf16.mxu1 %v1243_v0  ;;  %v1040_v9 = vld [vmem:[%s1560_s18] ss:$0 sm:$0xff] }
 0x296   :  { %v1138_v10 = vpop.f32.mrf.mxu0 }
 0x297   :  { %1142 = vmatmul.mubr.msk.bf16.vlgmr.msra.gmra.mxu1 %vm237_vm3, %v1399_v14 }
 0x298   :  { %1155 = vmatprep.mubr.msk.bf16.mxu1 %vm1244_vm0, %v1243_v0  ;;  %1152 = vmatpush3.bf16.msra.mxu1 %v1211_v26 }
 0x299   :  { %1153 = vmatprep.subr.bf16.mxu1 %v1243_v0 }
 0x29c   :  { %1154 = vmatpush3.bf16.msra.mxu1 %v1212_v32 }
 0x29d   :  { %1167 = vmatprep.subr.bf16.mxu1 %v1243_v0 }
 0x29f   :  { %1156 = vmatmul.mubr.msk.bf16.vlgmr.msra.gmra.mxu1 %vm134_vm1, %v1383_v6 }
 0x2a0   :  { %1168 = vmatpush3.bf16.msra.mxu1 %v1213_v33  ;;  %1171 = vmatprep.mubr.msk.bf16.mxu1 %vm1244_vm0, %v1243_v0 }
 0x2a1   :  { %1169 = vmatprep.subr.bf16.mxu1 %v1243_v0 }
 0x2a4   :  { %1170 = vmatpush3.bf16.msra.mxu1 %v1214_v34 }
 0x2a5   :  { %1183 = vmatprep.subr.bf16.mxu1 %v1243_v0 }
 0x2a7   :  { %1172 = vmatmul.mubr.msk.bf16.vlgmr.msra.gmra.mxu1 %vm134_vm1, %v1383_v6 }
 0x2a8   :  { %1187 = vmatprep.mubr.msk.bf16.mxu1 %vm1244_vm0, %v1243_v0  ;;  %1184 = vmatpush3.bf16.msra.mxu1 %v1216_v36 }
 0x2a9   :  { %1185 = vmatprep.subr.bf16.mxu1 %v1243_v0 }
 0x2ac   :  { %1186 = vmatpush3.bf16.msra.mxu1 %v1218_v38  ;;  %v1050_v38 = vld [vmem:[%s1563_s9] ss:$0 sm:$0xff] }
 0x357   :  { %v554_v17 = vpop.f32.mrf.mxu1 }
 0x358   :  { %v561_v18 = vmax.f32 %v554_v17, 1e-30 }
 0x359   :  { %v1143_v19 = vpop.f32.mrf.mxu1 }
 0x35a   :  { %1227 = vrcp.f32 %v561_v18 }
 0x35b   :  { %v557_v20 = vpop.f32.mrf.mxu1 }
 0x35c   :  { %v562_v21 = vmax.f32 %v557_v20, 1e-30 }
 0x35d   :  { %v1144_v22 = vpop.f32.mrf.mxu1 }
 0x35e   :  { %1229 = vrcp.f32 %v562_v21 }
 0x35f   :  { %v672_v52 = vpop.f32.mrf.mxu1 }
 0x361   :  { %v1157_v53 = vpop.f32.mrf.mxu1 }
 0x367   :  { %v1228_v23 = vpop.eup %1227 }
 0x368   :  { %v565_v24 = vmul.f32 %v1228_v23, %v1224_v54  ;;  %v675_v54 = vpop.f32.mrf.mxu1 }
 0x36a   :  { %569 = vperm.xlu0 %1202, %v565_v24  }
 0x36b   :  { %v1230_v14 = vpop.eup %1229 }
 0x36c   :  { %v566_v25 = vmul.f32 %v1230_v14, %v1226_v55  ;;  %v1158_v55 = vpop.f32.mrf.mxu1  ;;  %v1046_v14 = vld [vmem:[%s1561_s20] ss:$0 sm:$0xff] }
 0x36e   :  { %574 = vperm.xlu0 %1202, %v566_v25   ;;  %v792_v56 = vpop.f32.mrf.mxu1 }
 0x3e5   :  { %v570_v27 = vpop.permute.xlu0 %569 }
 0x3e6   :  { %v577_v29 = vmul.f32 %v570_v27, %v448_v11  ;;  %v1042_v27 = vld [vmem:[%s1562_s19] ss:$0 sm:$0xff] }
 0x3e9   :  { %v575_v28 = vpop.permute.xlu0 %574 }
 0x3ea   :  { %v578_v30 = vmul.f32 %v575_v28, %v451_v13 }
 0x3ec   :  { %v579_v31 = vpack.c.bf16 %v578_v30, %v577_v29 }
 0x3ee   :  { %1146 = vmatpush3.bf16.msra.mxu0 %v579_v31 }
 0x3ef   :  { %1159 = vmatprep.subr.bf16.mxu0 %v1243_v0 }
 0x3f1   :  { %1148 = vmatmul.mubr.msk.bf16.vlgmr.msra.gmra.mxu0 %vm472_vm7, %v116_v57  ;;  %v1173_v57 = vpop.f32.mrf.mxu1 }
 0x3f2   :  { %1163 = vmatprep.mubr.msk.bf16.mxu0 %vm1244_vm0, %v1243_v0  ;;  %1160 = vmatpush3.bf16.msra.mxu0 %v1215_v35 }
 0x3f3   :  { %1161 = vmatprep.subr.bf16.mxu0 %v1243_v0  ;;  %v795_v58 = vpop.f32.mrf.mxu1 }
 0x3f5   :  { %v1174_v59 = vpop.f32.mrf.mxu1 }
 0x3f6   :  { %1162 = vmatpush3.bf16.msra.mxu0 %v1217_v37 }
 0x3f7   :  { %1175 = vmatprep.subr.bf16.mxu0 %v1243_v0 }
 0x4b1   :  { %v614_v39 = vpop.f32.mrf.mxu0 }
 0x4b2   :  { %v621_v40 = vmul.f32 1.442695, %v614_v39  ;;  %vm620_vm8 = vcmp.gt.f32.partialorder %v614_v39, 0.0 }
 0x4b3   :  { %v1149_v41 = vpop.f32.mrf.mxu0 }
 0x4b4   :  { %1231 = vpow2.f32 %v621_v40  ;;  %v1051_v40 = vld [vmem:[%s1564_s10] ss:$0 sm:$0xff] }
 0x4b5   :  { %v617_v42 = vpop.f32.mrf.mxu0 }
 0x4b7   :  { %v1150_v43 = vpop.f32.mrf.mxu0 }
 0x4c1   :  { %v1232_v44 = vpop.eup %1231 }
 0x4c2   :  { %v1025_v45 = vadd.f32 -1.0, %v1232_v44 }
 0x4c4   :  { %v624_v46 = vsel %vm620_vm8, %v614_v39, %v1025_v45 }
 0x4c5   :  { %v625_v48 = vpack.c.bf16 %v624_v46, %v624_v46 }
 0x4c7   :  { %1164 = vmatmul.mubr.msk.bf16.vlgmr.msra.gmra.mxu0 %vm134_vm1, %v625_v48  ;;  %1188 = vmatmul.mubr.msk.bf16.vlgmr.msra.gmra.mxu1 %vm134_vm1, %v625_v48 }
 0x4c8   :  { %1176 = vmatpush3.bf16.msra.mxu0 %v1219_v47  ;;  %1179 = vmatprep.mubr.msk.bf16.mxu0 %vm1244_vm0, %v1243_v0 }
 0x4c9   :  { %1177 = vmatprep.subr.bf16.mxu0 %v1243_v0 }
 0x4cc   :  { %1178 = vmatpush3.bf16.msra.mxu0 %v1220_v49 }
 0x4cd   :  { %1191 = vmatprep.subr.bf16.mxu0 %v1243_v0 }
 0x4cf   :  { %1180 = vmatmul.mubr.msk.bf16.vlgmr.msra.gmra.mxu0 %vm134_vm1, %v625_v48 }
 0x4d0   :  { %1192 = vmatpush3.bf16.msra.mxu0 %v1221_v50  ;;  %1195 = vmatprep.mubr.msk.bf16.mxu0 %vm1244_vm0, %v1243_v0 }
 0x4d1   :  { %1193 = vmatprep.subr.bf16.mxu0 %v1243_v0 }
 0x4d4   :  { %1194 = vmatpush3.bf16.msra.mxu0 %v1222_v51 }
 0x4d7   :  { %1196 = vmatmul.mubr.msk.bf16.vlgmr.msra.gmra.mxu0 %vm134_vm1, %v1383_v6 }
 0x587   :  { %v727_v61 = vpop.f32.mrf.mxu0  ;;  %v915_v62 = vpop.f32.mrf.mxu1 }
 0x588   :  { %v728_v63 = vadd.f32 %v727_v61, %v672_v52  ;;  %v916_v29 = vadd.f32 %v1042_v27, %v915_v62 }
 0x589   :  { %v1165_v0 = vpop.f32.mrf.mxu0  ;;  %v1189_v1 = vpop.f32.mrf.mxu1 }
 0x58a   :  { %v739_v2 = vadd.f32 %v1032_v60, %v728_v63 }
 0x58b   :  { %v730_v3 = vpop.f32.mrf.mxu0  ;;  %v918_v6 = vpop.f32.mrf.mxu1 }
 0x58c   :  { %v1033_v4 = vmul.f32 -1.442695, %v739_v2 }
 0x58d   :  { %v1166_v7 = vpop.f32.mrf.mxu0  ;;  %v1190_v8 = vpop.f32.mrf.mxu1 }
 0x58e   :  { %1233 = vpow2.f32 %v1033_v4 }
 0x58f   :  { %v844_v10 = vpop.f32.mrf.mxu0 }
 0x590   :  { %v845_v11 = vadd.f32 %v844_v10, %v792_v56 }
 0x591   :  { %v1181_v12 = vpop.f32.mrf.mxu0 }
 0x592   :  { %v856_v13 = vadd.f32 %v1040_v9, %v845_v11 }
 0x593   :  { %v847_v15 = vpop.f32.mrf.mxu0 }
 0x594   :  { %v1041_v16 = vmul.f32 -1.442695, %v856_v13 }
 0x595   :  { %v1182_v17 = vpop.f32.mrf.mxu0 }
 0x596   :  { %1235 = vpow2.f32 %v1041_v16 }
 0x597   :  { %v973_v18 = vpop.f32.mrf.mxu0 }
 0x598   :  { %v974_v26 = vadd.f32 %v1046_v14, %v973_v18 }
 0x599   :  { %v1197_v19 = vpop.f32.mrf.mxu0 }
 0x59b   :  { %v1234_v20 = vpop.eup %1233  ;;  %v976_v21 = vpop.f32.mrf.mxu0 }
 0x59c   :  { %v743_v22 = vadd.f32 1.0, %v1234_v20 }
 0x59d   :  { %v1198_v23 = vpop.f32.mrf.mxu0 }
 0x59e   :  { %1237 = vrcp.f32 %v743_v22 }
 0x5a3   :  { %v1236_v24 = vpop.eup %1235 }
 0x5a4   :  { %v860_v25 = vadd.f32 1.0, %v1236_v24 }
 0x5a6   :  { %1239 = vrcp.f32 %v860_v25 }
 0x5ab   :  { %v1238_v28 = vpop.eup %1237 }
 0x5ac   :  { %v979_v30 = vmul.f32 %v1238_v28, %v974_v26 }
 0x5ae   :  { %v980_v31 = vadd.f32 %v979_v30, %v916_v29 }
 0x5b0   :  { %1241 = vtanh.f32 %v980_v31 }
 0x5b3   :  { %v1240_v32 = vpop.eup %1239 }
 0x5b4   :  { %v982_v33 = vsub.f32 1.0, %v1240_v32  ;;  %v984_v35 = vmul.f32 %v1240_v32, %v1379_v5 }
 0x5bd   :  { %v1242_v34 = vpop.eup %1241 }
 0x5be   :  { %v983_v36 = vmul.f32 %v1242_v34, %v982_v33 }
 0x5c0   :  { %v985_v37 = vadd.f32 %v984_v35, %v983_v36 }
 0x5c2   :  { %v986_v39 = vmax.f32 %v985_v37, 0.0 }
 0x5c4   :  { %v993_v41 = vmul.f32 %v1050_v38, %v986_v39 }
 0x5c6   :  { %v1000_v42 = vadd.f32 %v1051_v40, %v993_v41 }
 0x5c8   :  { %1001 = vst.msk [vmem:[%s1565_s21] sm:$0xff] %vm134_vm1, %v1000_v42 }

// kernel: forward.7
= control target key start
LH: loop header
LB: loop body
LE: loop exit
PB: predicated region body
PF: predicated region fallthrough
CT: control target
= control target key end

     0   :  { %v372_v0 = vmov 0.0   ;;  %vm373_vm0 = vmmov 0   ;;  %vm84_vm1 = vcmask 523264   ;;  %vm171_vm3 = vcmask 261120   ;;  %s490_s1 = inlined_call_operand.vmem [shape: bf16[64,32], index: 1, kind: input, shape index: {}]   ;;  %s491_s0 = inlined_call_operand.vmem [shape: f32[2,64], index: 0, kind: input, shape index: {}]   ;;  %s492_s5 = inlined_call_operand.vmem [shape: bf16[32,32], index: 5, kind: input, shape index: {}]   ;;  %s493_s2 = inlined_call_operand.vmem [shape: f32[1,32], index: 2, kind: input, shape index: {}]   ;;  %s494_s3 = inlined_call_operand.vmem [shape: f32[1,32], index: 3, kind: input, shape index: {}]   ;;  %s495_s4 = inlined_call_operand.vmem [shape: f32[1,32], index: 4, kind: input, shape index: {}]   ;;  %s496_s9 = inlined_call_operand.vmem [shape: bf16[32,1], index: 9, kind: input, shape index: {}]   ;;  %s497_s10 = inlined_call_operand.<no memory space> [shape: f32[1,1], index: 10, kind: input, shape index: {}]   ;;  %s498_s6 = inlined_call_operand.vmem [shape: f32[1,32], index: 6, kind: input, shape index: {}]   ;;  %s499_s7 = inlined_call_operand.vmem [shape: f32[1,32], index: 7, kind: input, shape index: {}]   ;;  %s500_s8 = inlined_call_operand.vmem [shape: f32[1,32], index: 8, kind: input, shape index: {}]   ;;  %s501_s11 = inlined_call_operand.vmem [shape: f32[2,1], index: 11, kind: output, shape index: {}]  }
   0x1   :  { %334 = vmatprep.subr.bf16.mxu0 %v372_v0  ;;  %v364_v1 = vld [vmem:[%s490_s1 + $0x18] sm:$0xff]   ;;  %342 = vmatprep.mubr.msk.bf16.mxu0 %vm373_vm0, %v372_v0  ;;  %v365_v2 = vld [vmem:[%s490_s1 + $0x10] sm:$0xff]   ;;  %v366_v3 = vld [vmem:[%s490_s1 + $0x8] sm:$0xff]   ;;  %v16_v24 = vstv %s497_s10  ;;  %vm299_vm5 = vcmask 1024  }
   0x2   :  { %346 = vmatprep.subr.bf16.mxu1 %v372_v0  ;;  %350 = vmatprep.mubr.msk.bf16.mxu1 %vm373_vm0, %v372_v0  ;;  %v367_v4 = vld [vmem:[%s490_s1] sm:$0xff]   ;;  %v368_v7 = vld [vmem:[%s492_s5 + $0x8] sm:$0xff]   ;;  %17 = vst [vmem:[#allocation2] sm:$0x1] %v16_v24 }
   0x3   :  { %335 = vmatpush3.bf16.msra.mxu0 %v364_v1  ;;  %v41_v5 = vld [vmem:[%s491_s0] sm:$0x3]  ;;  %347 = vmatpush3.bf16.msra.mxu1 %v368_v7  ;;  %v370_v22 = vld [vmem:[%s496_s9 + $0x8] sm:$0xff]  }
   0x4   :  { %336 = vmatprep.subr.bf16.mxu0 %v372_v0  ;;  %v53_v6 = vpack.c.bf16 %v41_v5, %v41_v5  ;;  %348 = vmatprep.subr.bf16.mxu1 %v372_v0  ;;  %v369_v8 = vld [vmem:[%s492_s5] sm:$0xff]  }
   0x5   :  { %v305_v9 = vld [vmem:[%s493_s2] ss:$0 sm:$0xff] }
   0x6   :  { %v311_v13 = vld [vmem:[%s494_s3] ss:$0 sm:$0xff] }
   0x7   :  { %337 = vmatpush3.bf16.msra.mxu0 %v365_v2  ;;  %349 = vmatpush3.bf16.msra.mxu1 %v369_v8  ;;  %v312_v17 = vld [vmem:[%s495_s4] ss:$0 sm:$0xff] }
   0x8   :  { %338 = vmatprep.subr.bf16.mxu0 %v372_v0  ;;  %354 = vmatprep.subr.bf16.mxu1 %v372_v0  ;;  %v371_v23 = vld [vmem:[%s496_s9] sm:$0xff]  }
   0x9   :  { %v313_v25 = vld [vmem:[%s498_s6] ss:$0 sm:$0xff] }
   0xa   :  { %v317_v29 = vld [vmem:[%s499_s7] ss:$0 sm:$0xff] }
   0xb   :  { %339 = vmatpush3.bf16.msra.mxu0 %v366_v3  ;;  %v318_v32 = vld [vmem:[%s500_s8] ss:$0 sm:$0xff] }
   0xc   :  { %340 = vmatprep.subr.bf16.mxu0 %v372_v0  ;;  %v319_v38 = vld [vmem:[#allocation2] ss:$0 sm:$0xff] }
   0xf   :  { %341 = vmatpush3.bf16.msra.mxu0 %v367_v4 }
  0x12   :  { %343 = vmatmul.mubr.msk.bf16.vlgmr.msra.gmra.mxu0 %vm84_vm1, %v53_v6 }
  0xd2   :  { %v122_v10 = vpop.f32.mrf.mxu0 }
  0xd3   :  { %v123_v11 = vadd.f32 %v305_v9, %v122_v10 }
  0xd4   :  { %v344_v12 = vpop.f32.mrf.mxu0 }
  0xd5   :  { %vm128_vm2 = vcmp.ge.f32.partialorder %v123_v11, 0.0  ;;  %v129_v14 = vmul.f32 0.01, %v123_v11 }
  0xd6   :  { %v125_v15 = vpop.f32.mrf.mxu0 }
  0xd7   :  { %v130_v16 = vsel %vm128_vm2, %v123_v11, %v129_v14 }
  0xd8   :  { %v137_v18 = vmul.f32 %v311_v13, %v130_v16  ;;  %v345_v19 = vpop.f32.mrf.mxu0 }
  0xda   :  { %v144_v20 = vadd.f32 %v312_v17, %v137_v18 }
  0xdc   :  { %v152_v21 = vpack.c.bf16 %v144_v20, %v144_v20 }
  0xde   :  { %351 = vmatmul.mubr.msk.bf16.vlgmr.msra.gmra.mxu1 %vm171_vm3, %v152_v21 }
  0xdf   :  { %358 = vmatprep.mubr.msk.bf16.mxu1 %vm373_vm0, %v372_v0  ;;  %355 = vmatpush3.bf16.msra.mxu1 %v370_v22 }
  0xe0   :  { %356 = vmatprep.subr.bf16.mxu1 %v372_v0 }
  0xe3   :  { %357 = vmatpush3.bf16.msra.mxu1 %v371_v23 }
 0x19e   :  { %v209_v26 = vpop.f32.mrf.mxu1 }
 0x19f   :  { %v210_v27 = vadd.f32 %v313_v25, %v209_v26 }
 0x1a0   :  { %v352_v28 = vpop.f32.mrf.mxu1 }
 0x1a1   :  { %vm215_vm4 = vcmp.ge.f32.partialorder %v210_v27, 0.0  ;;  %v216_v30 = vmul.f32 0.01, %v210_v27 }
 0x1a2   :  { %v212_v31 = vpop.f32.mrf.mxu1 }
 0x1a3   :  { %v217_v33 = vsel %vm215_vm4, %v210_v27, %v216_v30 }
 0x1a4   :  { %v224_v34 = vmul.f32 %v317_v29, %v217_v33  ;;  %v353_v35 = vpop.f32.mrf.mxu1 }
 0x1a6   :  { %v231_v36 = vadd.f32 %v318_v32, %v224_v34 }
 0x1a8   :  { %v237_v37 = vpack.c.bf16 %v231_v36, %v231_v36 }
 0x1aa   :  { %359 = vmatmul.mubr.msk.bf16.vlgmr.msra.gmra.mxu1 %vm171_vm3, %v237_v37 }
 0x26a   :  { %v293_v39 = vpop.f32.mrf.mxu1 }
 0x26b   :  { %v294_v40 = vadd.f32 %v319_v38, %v293_v39 }
 0x26c   :  { %v360_v41 = vpop.f32.mrf.mxu1 }
 0x26d   :  { %300 = vst.msk [vmem:[%s501_s11] sm:$0x3] %vm299_vm5, %v294_v40 }
 0x26e   :  { %v296_v42 = vpop.f32.mrf.mxu1 }
 0x270   :  { %v361_v43 = vpop.f32.mrf.mxu1 }

// kernel: forward.6
= control target key start
LH: loop header
LB: loop body
LE: loop exit
PB: predicated region body
PF: predicated region fallthrough
CT: control target
= control target key end

     0   :  { %v628_v0 = vmov 0.0   ;;  %vm629_vm0 = vmmov 0   ;;  %vm85_vm1 = vcmask 261120   ;;  %v630_v7 = vmov 0   ;;  %s809_s6 = inlined_call_operand.vmem [shape: bf16[32,32], index: 6, kind: input, shape index: {}]   ;;  %s810_s7 = inlined_call_operand.vmem [shape: bf16[32,32], index: 7, kind: input, shape index: {}]   ;;  %s811_s0 = inlined_call_operand.vmem [shape: f32[8,32], index: 0, kind: input, shape index: {}]   ;;  %s812_s2 = inlined_call_operand.vmem [shape: bf16[12,8], index: 2, kind: input, shape index: {}]   ;;  %s813_s1 = inlined_call_operand.vmem [shape: bf16[12,8], index: 1, kind: input, shape index: {}]   ;;  %s814_s3 = inlined_call_operand.vmem [shape: f32[12,1], index: 3, kind: input, shape index: {}]   ;;  %s815_s4 = inlined_call_operand.vmem [shape: f32[12,2], index: 4, kind: input, shape index: {}]   ;;  %s816_s12 = inlined_call_operand.vmem [shape: bf16[32,1], index: 12, kind: input, shape index: {}]   ;;  %s817_s13 = inlined_call_operand.<no memory space> [shape: f32[1,1], index: 13, kind: input, shape index: {}]   ;;  %s818_s8 = inlined_call_operand.vmem [shape: f32[1,32], index: 8, kind: input, shape index: {}]   ;;  %s819_s9 = inlined_call_operand.vmem [shape: f32[1,32], index: 9, kind: input, shape index: {}]   ;;  %s820_s10 = inlined_call_operand.vmem [shape: f32[1,32], index: 10, kind: input, shape index: {}]   ;;  %s821_s11 = inlined_call_operand.vmem [shape: f32[1,32], index: 11, kind: input, shape index: {}]   ;;  %s822_s5 = inlined_call_operand.vmem [shape: bf16[2,12], index: 5, kind: input, shape index: {}]   ;;  %s823_s15 = inlined_call_operand.vmem [shape: f32[2,32], index: 15, kind: output, shape index: {1}]   ;;  %s824_s14 = inlined_call_operand.vmem [shape: f32[2,32], index: 14, kind: output, shape index: {0}]  }
   0x1   :  { %566 = vmatprep.subr.bf16.mxu0 %v628_v0  ;;  %574 = vmatprep.subr.bf16.mxu1 %v628_v0  ;;  %v616_v1 = vld [vmem:[%s809_s6 + $0x8] sm:$0xff]   ;;  %v618_v3 = vld [vmem:[%s809_s6] sm:$0xff]   ;;  %v631_v12 = vmov 1   ;;  %vm194_vm3 = vcmask 1043456   ;;  %vm190_vm4 = vcmask 64512   ;;  %v21_v29 = vstv %s817_s13 }
   0x2   :  { %v617_v2 = vld [vmem:[%s810_s7 + $0x8] sm:$0xff]   ;;  %570 = vmatprep.mubr.msk.bf16.mxu0 %vm629_vm0, %v628_v0  ;;  %578 = vmatprep.mubr.msk.bf16.mxu1 %vm629_vm0, %v628_v0  ;;  %v619_v4 = vld [vmem:[%s810_s7] sm:$0xff]   ;;  %22 = vst [vmem:[#allocation2] sm:$0x1] %v21_v29  ;;  %vm426_vm8 = vcmask 1045504   ;;  %vm491_vm10 = vcmask 257024  }
   0x3   :  { %567 = vmatpush3.bf16.msra.mxu0 %v616_v1  ;;  %575 = vmatpush3.bf16.msra.mxu1 %v617_v2  ;;  %v69_v5 = vld [vmem:[%s811_s0] sm:$0xff]  ;;  %v292_v10 = vld [vmem:[%s814_s3 + $0x8] sm:$0xf]  ;;  %vm422_vm13 = vcmask 97280  }
   0x4   :  { %568 = vmatprep.subr.bf16.mxu0 %v628_v0  ;;  %576 = vmatprep.subr.bf16.mxu1 %v628_v0  ;;  %v72_v6 = vpack.c.bf16 %v69_v5, %v69_v5  ;;  %v291_v8 = vld [vmem:[%s814_s3] sm:$0xff]  ;;  %v622_v27 = vld [vmem:[%s816_s12 + $0x8] sm:$0xff]  }
   0x5   :  { %612 = vset.pattern.permute.xlu0 %v630_v7  ;;  %v472_v9 = vld [vmem:[%s815_s4] sm:$0xff]  ;;  %613 = vset.pattern.permute.xlu1 %v630_v7  ;;  %v473_v5 = vld [vmem:[%s815_s4 + $0x8] sm:$0xf] }
   0x6   :  { %295 = vperm.xlu0 %612, %v291_v8   ;;  %vm476_vm2 = vcmp.gt.f32.partialorder %v472_v9, 0.0  ;;  %v621_v20 = vld [vmem:[%s813_s1] sm:$0x3f]   ;;  %vm477_vm7 = vcmp.gt.f32.partialorder %v473_v5, 0.0 }
   0x7   :  { %569 = vmatpush3.bf16.msra.mxu0 %v618_v3  ;;  %577 = vmatpush3.bf16.msra.mxu1 %v619_v4  ;;  %v478_v11 = vsel %vm476_vm2, 1, %v630_v7  ;;  %v620_v23 = vld [vmem:[%s812_s2] sm:$0x3f]   ;;  %v479_v8 = vsel %vm477_vm7, 1, %v630_v7  ;;  %vm470_vm2 = vcmask 254976  }
   0x8   :  { %582 = vmatprep.subr.bf16.mxu0 %v628_v0  ;;  %588 = vmatprep.subr.bf16.mxu1 %v628_v0  ;;  %v623_v28 = vld [vmem:[%s816_s12] sm:$0xff]  }
   0x9   :  { %v542_v30 = vld [vmem:[%s818_s8] ss:$0 sm:$0xff] }
   0xa   :  { %571 = vmatmul.mubr.msk.bf16.vlgmr.msra.gmra.mxu0 %vm85_vm1, %v72_v6  ;;  %579 = vmatmul.mubr.msk.bf16.vlgmr.msra.gmra.mxu1 %vm85_vm1, %v72_v6  ;;  %v543_v37 = vld [vmem:[%s819_s9] ss:$0 sm:$0xff] }
   0xb   :  { %584 = vmatprep.mubr.msk.bf16.mxu0 %vm629_vm0, %v628_v0  ;;  %590 = vmatprep.mubr.msk.bf16.mxu1 %vm629_vm0, %v628_v0  ;;  %v544_v50 = vld [vmem:[%s820_s10] ss:$0 sm:$0xff] }
   0xc   :  { %300 = vperm.xlu0 %612, %v292_v10   ;;  %v545_v56 = vld [vmem:[%s821_s11] ss:$0 sm:$0xff] }
   0xd   :  { %v546_v61 = vld [vmem:[#allocation2] ss:$0 sm:$0xff] }
  0x10   :  { %481 = vperm.xlu0 %612, %v478_v11  }
  0x14   :  { %614 = vset.pattern.permute.xlu0 %v631_v12 }
  0x15   :  { %503 = vperm.xlu0 %614, %v478_v11  }
  0x81   :  { %v296_v31 = vpop.permute.xlu0 %295 }
  0x82   :  { %v309_v32 = vmul.f32 %v542_v30, %v296_v31 }
  0x87   :  { %v301_v41 = vpop.permute.xlu0 %300 }
  0x88   :  { %v310_v43 = vmul.f32 %v542_v30, %v301_v41 }
  0x8b   :  { %v482_v10 = vpop.permute.xlu0 %481 }
  0x8c   :  { %vm486_vm9 = vcmp.eq.s32.totalorder %v482_v10, 1 }
  0xca   :  { %v123_v13 = vpop.f32.mrf.mxu0  ;;  %v178_v15 = vpop.f32.mrf.mxu1 }
  0xcb   :  { %v129_v14 = vpack.c.bf16 %v123_v13, %v123_v13  ;;  %v184_v16 = vpack.c.bf16 %v178_v15, %v178_v15  ;;  %v504_v15 = vpop.permute.xlu0 %503 }
  0xcc   :  { %v572_v17 = vpop.f32.mrf.mxu0  ;;  %v580_v19 = vpop.f32.mrf.mxu1  ;;  %vm508_vm12 = vcmp.eq.s32.totalorder %v504_v15, 1 }
  0xcd   :  { %v248_v18 = vsel %vm194_vm3, %v129_v14, 0  ;;  %v196_v21 = vsel %vm194_vm3, %v184_v16, 0 }
  0xce   :  { %v126_v22 = vpop.f32.mrf.mxu0  ;;  %589 = vmatpush3.bf16.msra.mxu1 %v248_v18  ;;  %v181_v24 = vpop.f32.mrf.mxu1  ;;  %583 = vmatpush3.bf16.msra.mxu0 %v196_v21 }
  0xcf   :  { %602 = vmatprep.subr.bf16.mxu1 %v628_v0  ;;  %594 = vmatprep.subr.bf16.mxu0 %v628_v0 }
  0xd0   :  { %v573_v25 = vpop.f32.mrf.mxu0  ;;  %v581_v26 = vpop.f32.mrf.mxu1 }
  0xd1   :  { %591 = vmatmul.mubr.msk.bf16.vlgmr.msra.gmra.mxu1 %vm190_vm4, %v621_v20  ;;  %585 = vmatmul.mubr.msk.bf16.vlgmr.msra.gmra.mxu0 %vm190_vm4, %v620_v23 }
  0xd2   :  { %604 = vmatprep.mubr.msk.bf16.mxu1 %vm629_vm0, %v628_v0  ;;  %598 = vmatprep.mubr.msk.bf16.mxu0 %vm629_vm0, %v628_v0 }
  0xd3   :  { %595 = vmatpush3.bf16.msra.mxu0 %v622_v27 }
  0xd4   :  { %596 = vmatprep.subr.bf16.mxu0 %v628_v0 }
  0xd7   :  { %597 = vmatpush3.bf16.msra.mxu0 %v623_v28 }
 0x191   :  { %v284_v33 = vpop.f32.mrf.mxu1  ;;  %v232_v34 = vpop.f32.mrf.mxu0 }
 0x192   :  { %v285_v35 = vadd.f32 %v284_v33, %v232_v34  ;;  %v474_v33 = vlaneseq }
 0x193   :  { %v592_v36 = vpop.f32.mrf.mxu1  ;;  %v586_v38 = vpop.f32.mrf.mxu0 }
 0x194   :  { %v311_v39 = vadd.f32 %v309_v32, %v285_v35  ;;  %v475_v38 = vshrl.u32 %v474_v33, 7 }
 0x195   :  { %v287_v40 = vpop.f32.mrf.mxu1  ;;  %v235_v42 = vpop.f32.mrf.mxu0 }
 0x196   :  { %v319_v44 = vadd.f32 %v543_v37, %v311_v39  ;;  %v288_v45 = vadd.f32 %v287_v40, %v235_v42  ;;  %vm500_vm15 = vcmp.eq.s32.totalorder %v475_v38, 0  ;;  %vm521_vm0 = vcmp.eq.s32.totalorder %v475_v38, 1 }
 0x197   :  { %v593_v46 = vpop.f32.mrf.mxu1  ;;  %v587_v47 = vpop.f32.mrf.mxu0 }
 0x198   :  { %vm321_vm5 = vcmp.ge.f32.partialorder %v319_v44, 0.0  ;;  %v323_v48 = vmul.f32 0.01, %v319_v44  ;;  %v312_v49 = vadd.f32 %v310_v43, %v288_v45 }
 0x19a   :  { %v325_v51 = vsel %vm321_vm5, %v319_v44, %v323_v48  ;;  %v320_v52 = vadd.f32 %v543_v37, %v312_v49 }
 0x19b   :  { %v333_v54 = vmul.f32 %v544_v50, %v325_v51 }
 0x19c   :  { %vm322_vm6 = vcmp.ge.f32.partialorder %v320_v52, 0.0  ;;  %v324_v53 = vmul.f32 0.01, %v320_v52 }
 0x19d   :  { %v341_v58 = vadd.f32 %v545_v56, %v333_v54 }
 0x19e   :  { %v326_v55 = vsel %vm322_vm6, %v320_v52, %v324_v53 }
 0x19f   :  { %v334_v57 = vmul.f32 %v544_v50, %v326_v55  ;;  %v488_v17 = vsel %vm486_vm9, %v341_v58, -1e+30  ;;  %v510_v23 = vsel %vm508_vm12, %v341_v58, -1e+30 }
 0x1a0   :  { %v490_v20 = vsel %vm85_vm1, %v488_v17, -inf  ;;  %v512_v27 = vsel %vm85_vm1, %v510_v23, -inf }
 0x1a1   :  { %v342_v59 = vadd.f32 %v545_v56, %v334_v57 }
 0x1a3   :  { %v343_v60 = vpack.c.bf16 %v342_v59, %v341_v58 }
 0x1a5   :  { %599 = vmatmul.mubr.msk.bf16.vlgmr.msra.gmra.mxu0 %vm85_vm1, %v343_v60 }
 0x265   :  { %v399_v62 = vpop.f32.mrf.mxu0 }
 0x266   :  { %v400_v63 = vadd.f32 %v546_v61, %v399_v62 }
 0x267   :  { %v600_v0 = vpop.f32.mrf.mxu0 }
 0x268   :  { %624 = vtanh.f32 %v400_v63 }
 0x269   :  { %v402_v1 = vpop.f32.mrf.mxu0 }
 0x26a   :  { %v403_v2 = vadd.f32 %v546_v61, %v402_v1 }
 0x26b   :  { %v601_v3 = vpop.f32.mrf.mxu0 }
 0x26c   :  { %626 = vtanh.f32 %v403_v2 }
 0x275   :  { %v625_v4 = vpop.eup %624 }
 0x276   :  { %411 = vperm.xlu1 %613, %v625_v4  }
 0x279   :  { %v627_v6 = vpop.eup %626 }
 0x27a   :  { %416 = vperm.xlu1 %613, %v627_v6  }
 0x27e   :  { %484 = vperm.xlu1 %613, %v479_v8  }
 0x282   :  { %615 = vset.pattern.permute.xlu1 %v631_v12  ;;  %v408_v12 = vld [vmem:[%s822_s5] sm:$0x1] }
 0x283   :  { %506 = vperm.xlu1 %615, %v479_v8  }
 0x2f1   :  { %v412_v9 = vpop.permute.xlu1 %411 }
 0x2f2   :  { %v419_v13 = vmul.f32 %v412_v9, %v341_v58 }
 0x2f5   :  { %v417_v11 = vpop.permute.xlu1 %416 }
 0x2f6   :  { %v420_v14 = vmul.f32 %v417_v11, %v342_v59 }
 0x2f8   :  { %v421_v16 = vpack.c.bf16 %v420_v14, %v419_v13 }
 0x2f9   :  { %v485_v18 = vpop.permute.xlu1 %484 }
 0x2fa   :  { %vm487_vm11 = vcmp.eq.s32.totalorder %v485_v18, 1  ;;  %v428_v19 = vsel %vm426_vm8, %v421_v16, 0 }
 0x2fb   :  { %v489_v7 = vsel %vm487_vm11, %v342_v59, -1e+30  ;;  %603 = vmatpush3.bf16.msra.mxu1 %v428_v19 }
 0x2fc   :  { %v492_v21 = vsel %vm491_vm10, %v489_v7, -inf }
 0x2fd   :  { %v493_v22 = vmax.f32 %v490_v20, %v492_v21 }
 0x2fe   :  { %605 = vmatmul.mubr.msk.bf16.vlgmr.msra.gmra.mxu1 %vm422_vm13, %v408_v12  ;;  %v507_v24 = vpop.permute.xlu1 %506 }
 0x2ff   :  { %v494_v25 = vrot.slane %v493_v22, 4  ;;  %vm509_vm14 = vcmp.eq.s32.totalorder %v507_v24, 1 }
 0x300   :  { %v511_v26 = vsel %vm509_vm14, %v342_v59, -1e+30 }
 0x301   :  { %v495_v28 = vmax.f32 %v493_v22, %v494_v25  ;;  %v513_v29 = vsel %vm491_vm10, %v511_v26, -inf }
 0x302   :  { %v514_v30 = vmax.f32 %v512_v27, %v513_v29 }
 0x303   :  { %v496_v31 = vrot.slane %v495_v28, 2 }
 0x304   :  { %v515_v32 = vrot.slane %v514_v30, 4 }
 0x305   :  { %v497_v34 = vmax.f32 %v495_v28, %v496_v31 }
 0x306   :  { %v516_v35 = vmax.f32 %v514_v30, %v515_v32 }
 0x307   :  { %v498_v36 = vrot.slane %v497_v34, 1 }
 0x308   :  { %v517_v37 = vrot.slane %v516_v35, 2 }
 0x309   :  { %v499_v40 = vmax.f32 %v497_v34, %v498_v36 }
 0x30a   :  { %v518_v39 = vmax.f32 %v516_v35, %v517_v37 }
 0x30b   :  { %v501_v43 = vsel %vm500_vm15, %v499_v40, 0.0 }
 0x30c   :  { %v519_v41 = vrot.slane %v518_v39, 1 }
 0x30e   :  { %v520_v42 = vmax.f32 %v518_v39, %v519_v41 }
 0x310   :  { %v522_v44 = vsel %vm521_vm0, %v520_v42, %v501_v43 }
 0x311   :  { %523 = vst.msk [vmem:[%s823_s15] sm:$0x3] %vm470_vm2, %v522_v44 }
 0x3be   :  { %v464_v45 = vpop.f32.mrf.mxu1 }
 0x3bf   :  { %471 = vst.msk [vmem:[%s824_s14] sm:$0x3] %vm470_vm2, %v464_v45 }
 0x3c0   :  { %v606_v46 = vpop.f32.mrf.mxu1 }
 0x3c2   :  { %v467_v47 = vpop.f32.mrf.mxu1 }
 0x3c4   :  { %v607_v48 = vpop.f32.mrf.mxu1 }

</bundles_post_ra>
